<compile_context>
chip_gen: v7x
topology: tpu7x:2x2x1
jax: 0.10.0
libtpu: 0.0.40
codegen_flags: <defaults>
</compile_context>

<pallas_src>
import functools

import jax
import jax.numpy as jnp
from jax.experimental import pallas as pl
from jax.experimental.pallas import tpu as pltpu


def _round_up(n, m):
    return ((n + m - 1) // m) * m


def _divisor_block(n, cap, quantum=1):
    """Largest multiple of `quantum` that divides n and is <= max(cap, quantum)."""
    b = max(quantum, (min(n, cap) // quantum) * quantum)
    while n % b:
        b -= quantum
    return b


def _aligned_block(n, cap):
    """Block size for a second-minor axis: a multiple of 8 dividing n, or n itself
    (full extent) -- both satisfy the TPU (8, 128) block constraint."""
    if n <= cap:
        return n
    if n % 8 != 0:
        # TODO(synk): pad this axis to a multiple of 8 instead of one full-extent block.
        return n
    return _divisor_block(n, cap, 8)


def _vmem_limit_bytes():
    """Scoped-VMEM limit: ~3/4 of physical VMEM (fallback if the query is unavailable)."""
    try:
        cap = int(pltpu.get_tpu_info().vmem_capacity_bytes)
    except Exception:
        cap = 64 * 1024 * 1024
    return int(min(cap * 3 // 4, 100 * 1024 * 1024))


# --------------------- Kernels A & C: row-blocked matmul + bias ------------------------
def _matmul_bias_kernel(x_ref, w_ref, b_ref, o_ref):
    # (rows, K) @ (K, N) + (1, N) -> (rows, N); final dtype written from the kernel.
    o_ref[...] = (jnp.dot(x_ref[...], w_ref[...],
                          preferred_element_type=jnp.float32)
                  + b_ref[...]).astype(o_ref.dtype)


# --------------------------- Kernel B: LSTM recurrence ---------------------------------
def _lstm_recurrence_kernel(gx_ref, h0_ref, c0_ref, whh_ref,
                            hs_ref, hn_ref, cn_ref, *, ts, hp):
    # hn_ref / cn_ref are constant-index resident output blocks used as the h/c carry.
    @pl.when(pl.program_id(1) == 0)
    def _():
        hn_ref[...] = h0_ref[...]
        cn_ref[...] = c0_ref[...]

    h = hn_ref[...]
    c = cn_ref[...]
    whh = whh_ref[...]

    # TODO(synk): hold whh resident in the MXU across steps via pltpu.matmul_push_rhs /
    # matmul_acc_lhs / matmul_pop (M = batch is tiny, so weight pushes dominate).
    def step(k, h, c):
        gates = gx_ref[k] + jnp.dot(h, whh, preferred_element_type=jnp.float32)
        # PyTorch gate order i, f, g, o; each gate sits in its own 128-aligned slot.
        i = jax.nn.sigmoid(gates[:, 0 * hp:1 * hp])
        f = jax.nn.sigmoid(gates[:, 1 * hp:2 * hp])
        g = jnp.tanh(gates[:, 2 * hp:3 * hp])
        o = jax.nn.sigmoid(gates[:, 3 * hp:4 * hp])
        c = f * c + i * g
        h = o * jnp.tanh(c)
        hs_ref[k] = h.astype(hs_ref.dtype)   # bf16 store -> halves h_seq HBM traffic
        return h, c

    if ts <= 32:
        for k in range(ts):                  # static unroll (LLO-visible, no spills)
            h, c = step(k, h, c)
    else:
        h, c = jax.lax.fori_loop(0, ts, lambda k, hc: step(k, *hc), (h, c), unroll=8)

    # One (B_blk, Hp) store per ts steps (not per step).
    hn_ref[...] = h
    cn_ref[...] = c


# ----------------------------------- Wrapper -------------------------------------------
def rnn_forward(x, prev_state, params, *, ts_recur=32, rows_matmul=512, tv_cap=2048):
    """Pallas implementation of RNNModule.forward.

    x          : (B, S, E) float32 (already-embedded input, batch_first)
    prev_state : tuple of (1, B, H) float32 arrays (h0, c0)
    returns    : logits (B, S, V), (h_n (1,B,H), c_n (1,B,H))
    """
    w_ih, w_hh, b_ih, b_hh, w_d, b_d = (
        params["w_ih"], params["w_hh"], params["b_ih"],
        params["b_hh"], params["w_d"], params["b_d"])

    B, S, E = x.shape
    H = w_hh.shape[1]
    V = w_d.shape[0]
    Hp = _round_up(H, 128)
    Vp = _round_up(V, 128)
    dtype = x.dtype
    out_itemsize = jnp.dtype(dtype).itemsize
    n_rows = B * S
    vlim = _vmem_limit_bytes()

    # Gate-major, 128-lane-aligned weight layouts (zero padding -> exact results).
    wih_p = jnp.transpose(
        jnp.pad(w_ih.reshape(4, H, E), ((0, 0), (0, Hp - H), (0, 0))),
        (2, 0, 1)).reshape(E, 4 * Hp).astype(jnp.float32)                  # (E, 4Hp)
    whh_p = jnp.transpose(
        jnp.pad(w_hh.reshape(4, H, H), ((0, 0), (0, Hp - H), (0, Hp - H))),
        (2, 0, 1)).reshape(Hp, 4 * Hp).astype(jnp.float32)                 # (Hp, 4Hp)
    bias_p = jnp.pad((b_ih + b_hh).reshape(4, H),
                     ((0, 0), (0, Hp - H))).reshape(1, 4 * Hp).astype(jnp.float32)
    wd_p = jnp.pad(w_d.T, ((0, Hp - H), (0, Vp - V))).astype(jnp.bfloat16)  # (Hp, Vp)
    bd_p = jnp.pad(b_d, (0, Vp - V)).reshape(1, Vp).astype(jnp.float32)

    h0 = jnp.pad(prev_state[0][0], ((0, 0), (0, Hp - H))).astype(jnp.float32)  # (B, Hp)
    c0 = jnp.pad(prev_state[1][0], ((0, 0), (0, Hp - H))).astype(jnp.float32)  # (B, Hp)

    # Time-major 2-D rows of x (smallest tensor; the big tensors never get an extra pass).
    x_tm2 = jnp.transpose(x, (1, 0, 2)).astype(jnp.float32).reshape(n_rows, E)

    # --- Kernel A: input projection (fully parallel over 2-D row blocks, f32) ---
    r_a = _aligned_block(n_rows, rows_matmul)
    while r_a > 8 and 2 * 4 * (r_a * (E + 4 * Hp) + (E + 1) * 4 * Hp) > vlim // 2:
        nxt = _aligned_block(n_rows, r_a // 2)
        if nxt >= r_a:
            break
        r_a = nxt
    gates2 = pl.pallas_call(
        _matmul_bias_kernel,
        out_shape=jax.ShapeDtypeStruct((n_rows, 4 * Hp), jnp.float32),
        grid_spec=pltpu.PrefetchScalarGridSpec(
            num_scalar_prefetch=0,
            grid=(n_rows // r_a,),
            # TODO(synk): pipeline_mode=pl.Buffered(1) for the constant weight/bias blocks.
            in_specs=[pl.BlockSpec((r_a, E), lambda i: (i, 0)),
                      pl.BlockSpec((E, 4 * Hp), lambda i: (0, 0)),
                      pl.BlockSpec((1, 4 * Hp), lambda i: (0, 0))],
            out_specs=pl.BlockSpec((r_a, 4 * Hp), lambda i: (i, 0))),
        compiler_params=pltpu.CompilerParams(
            dimension_semantics=("parallel",), vmem_limit_bytes=vlim),
    )(x_tm2, wih_p, bias_p)
    gates_x = gates2.reshape(S, B, 4 * Hp)               # free reshape (time-major rows)

    # --- Kernel B: sequential LSTM recurrence, ts_r steps per grid iteration ---
    nb = 2 if B % 16 == 0 else 1                         # batch split across v7x cores
    ts_r = _divisor_block(S, ts_recur)                   # TODO(synk): pad S if prime
    h_seq, h_n, c_n = pl.pallas_call(
        functools.partial(_lstm_recurrence_kernel, ts=ts_r, hp=Hp),
        out_shape=(jax.ShapeDtypeStruct((S, B, Hp), jnp.bfloat16),
                   jax.ShapeDtypeStruct((B, Hp), jnp.float32),
                   jax.ShapeDtypeStruct((B, Hp), jnp.float32)),
        grid_spec=pltpu.PrefetchScalarGridSpec(
            num_scalar_prefetch=0,
            grid=(nb, S // ts_r),
            # TODO(synk): pl.Buffered(1) (or bf16) for whh/h0/c0 to free VMEM at large Hp.
            in_specs=[pl.BlockSpec((ts_r, B // nb, 4 * Hp), lambda p, t: (t, p, 0)),
                      pl.BlockSpec((B // nb, Hp), lambda p, t: (p, 0)),
                      pl.BlockSpec((B // nb, Hp), lambda p, t: (p, 0)),
                      pl.BlockSpec((Hp, 4 * Hp), lambda p, t: (0, 0))],
            out_specs=(pl.BlockSpec((ts_r, B // nb, Hp), lambda p, t: (t, p, 0)),
                       pl.BlockSpec((B // nb, Hp), lambda p, t: (p, 0)),
                       pl.BlockSpec((B // nb, Hp), lambda p, t: (p, 0)))),
        compiler_params=pltpu.CompilerParams(
            dimension_semantics=("parallel", "arbitrary"),   # true recurrence on time
            vmem_limit_bytes=vlim),
    )(gates_x, h0, c0, whh_p)

    # --- Kernel C: dense head (vocab OUTER so W_d streams once; bf16 MXU matmul) ---
    # Reorder only the small bf16 h_seq to batch-first; logits come out batch-first.
    h2d = jnp.transpose(h_seq, (1, 0, 2)).reshape(n_rows, Hp)       # (B*S, Hp) bf16

    tv = _divisor_block(Vp, tv_cap, 128)
    r_d = _aligned_block(n_rows, rows_matmul)

    def _head_bytes(r, t):
        return 2 * (r * Hp * 2 + Hp * t * 2 + t * 4 + r * t * out_itemsize)

    while _head_bytes(r_d, tv) > vlim // 2:
        if tv > 128:
            tv = _divisor_block(Vp, tv // 2, 128)
        else:
            nxt = _aligned_block(n_rows, r_d // 2)
            if nxt >= r_d or r_d <= 8:
                break
            r_d = nxt

    logits2 = pl.pallas_call(
        _matmul_bias_kernel,
        out_shape=jax.ShapeDtypeStruct((n_rows, Vp), dtype),
        grid_spec=pltpu.PrefetchScalarGridSpec(
            num_scalar_prefetch=0,
            grid=(Vp // tv, n_rows // r_d),                 # vocab outer, rows inner
            in_specs=[pl.BlockSpec((r_d, Hp), lambda v, i: (i, 0)),
                      pl.BlockSpec((Hp, tv), lambda v, i: (0, v)),
                      pl.BlockSpec((1, tv), lambda v, i: (0, v))],
            out_specs=pl.BlockSpec((r_d, tv), lambda v, i: (i, v))),
        compiler_params=pltpu.CompilerParams(
            dimension_semantics=("parallel", "parallel"), vmem_limit_bytes=vlim),
    )(h2d, wd_p, bd_p)

    logits = logits2.reshape(B, S, Vp)                      # free reshape (batch-first)
    if Vp != V:
        logits = logits[:, :, :V]                           # strip vocab padding only
    h_out = h_n[:, :H].astype(dtype)
    c_out = c_n[:, :H].astype(dtype)
    return logits, (h_out[None], c_out[None])


# ----------------------------- Pure-JAX reference --------------------------------------
def rnn_reference(x, prev_state, params):
    """Matches PyTorch nn.LSTM(batch_first=True) + nn.Linear semantics."""
    w_ih, w_hh, b_ih, b_hh, w_d, b_d = (
        params["w_ih"], params["w_hh"], params["b_ih"],
        params["b_hh"], params["w_d"], params["b_d"])
    h = prev_state[0][0]
    c = prev_state[1][0]
    H = h.shape[1]

    def step(carry, x_t):
        h, c = carry
        gates = x_t @ w_ih.T + b_ih + h @ w_hh.T + b_hh
        i = jax.nn.sigmoid(gates[:, 0 * H:1 * H])
        f = jax.nn.sigmoid(gates[:, 1 * H:2 * H])
        g = jnp.tanh(gates[:, 2 * H:3 * H])
        o = jax.nn.sigmoid(gates[:, 3 * H:4 * H])
        c = f * c + i * g
        h = o * jnp.tanh(c)
        return (h, c), h

    (h, c), hs = jax.lax.scan(step, (h, c), jnp.transpose(x, (1, 0, 2)))
    out = jnp.transpose(hs, (1, 0, 2))                 # (B, S, H)
    logits = out @ w_d.T + b_d
    return logits, (h[None], c[None])


def init_params(key, n_vocab, embedding_size, lstm_size):
    """Deterministic parameter init mirroring PyTorch's U(-1/sqrt(H), 1/sqrt(H))."""
    ks = jax.random.split(key, 6)
    k = 1.0 / jnp.sqrt(jnp.float32(lstm_size))
    u = lambda kk, shape: jax.random.uniform(kk, shape, jnp.float32, -k, k)
    return {
        "w_ih": u(ks[0], (4 * lstm_size, embedding_size)),
        "w_hh": u(ks[1], (4 * lstm_size, lstm_size)),
        "b_ih": u(ks[2], (4 * lstm_size,)),
        "b_hh": u(ks[3], (4 * lstm_size,)),
        "w_d":  u(ks[4], (n_vocab, lstm_size)),
        "b_d":  u(ks[5], (n_vocab,)),
    }


if __name__ == "__main__":
    n_vocab, seq_size, embedding_size, lstm_size = 64, 8, 32, 32
    batch = 8

    key = jax.random.PRNGKey(0)
    k_param, k_x = jax.random.split(key)
    params = init_params(k_param, n_vocab, embedding_size, lstm_size)

    # x is the (already-embedded) input sequence, as RNNModule.forward expects.
    x = jax.random.normal(k_x, (batch, seq_size, embedding_size), jnp.float32)
    prev_state = (jnp.zeros((1, batch, lstm_size), jnp.float32),
                  jnp.zeros((1, batch, lstm_size), jnp.float32))

    logits, (h_n, c_n) = jax.block_until_ready(
        jax.jit(functools.partial(rnn_forward, params=params))(x, prev_state))

    logits_ref, (h_ref, c_ref) = rnn_reference(x, prev_state, params)

    assert logits.shape == (batch, seq_size, n_vocab)
    assert h_n.shape == (1, batch, lstm_size) and c_n.shape == (1, batch, lstm_size)
    assert jnp.allclose(logits, logits_ref, atol=1e-2, rtol=1e-2)
    assert jnp.allclose(h_n, h_ref, atol=1e-2, rtol=1e-2)
    assert jnp.allclose(c_n, c_ref, atol=1e-2, rtol=1e-2)

    print("KERNEL_OK")
</pallas_src>

<mosaic_0001>
module attributes {stable_mosaic.version = 11 : i64} {
  func.func @_lstm_recurrence_kernel(%arg0: i32, %arg1: i32, %arg2: memref<8x8x512xf32, #tpu.memory_space<vmem>>, %arg3: memref<8x128xf32, #tpu.memory_space<vmem>>, %arg4: memref<8x128xf32, #tpu.memory_space<vmem>>, %arg5: memref<128x512xf32, #tpu.memory_space<vmem>>, %arg6: memref<8x8x128xbf16, #tpu.memory_space<vmem>>, %arg7: memref<8x128xf32, #tpu.memory_space<vmem>>, %arg8: memref<8x128xf32, #tpu.memory_space<vmem>>) attributes {dimension_semantics = [#tpu.dimension_semantics<parallel>, #tpu.dimension_semantics<arbitrary>], iteration_bounds = array<i64: 1, 1>, scalar_prefetch = 0 : i64, scratch_operands = 0 : i64, tpu.core_type = #tpu.core_type<tc>, window_params = [{transform_indices = @transform_0, window_bounds = array<i64: 8, 8, 512>}, {transform_indices = @transform_1, window_bounds = array<i64: 8, 128>}, {transform_indices = @transform_2, window_bounds = array<i64: 8, 128>}, {pipeline_mode = #tpu.pipeline_mode<synchronous>, transform_indices = @transform_3, window_bounds = array<i64: 128, 512>}, {transform_indices = @transform_4, window_bounds = array<i64: 8, 8, 128>}, {transform_indices = @transform_5, window_bounds = array<i64: 8, 128>}, {transform_indices = @transform_6, window_bounds = array<i64: 8, 128>}]} {
    %c0_i32 = arith.constant 0 : i32
    %0 = arith.cmpi eq, %arg1, %c0_i32 : i32
    %1 = arith.extui %0 : i1 to i32
    %c0_i32_0 = arith.constant 0 : i32
    %2 = arith.cmpi ne, %1, %c0_i32_0 : i32
    scf.if %2 {
      %c0_82 = arith.constant 0 : index
      %c0_83 = arith.constant 0 : index
      %272 = vector.load %arg3[%c0_82, %c0_83] : memref<8x128xf32, #tpu.memory_space<vmem>>, vector<8x128xf32>
      %c0_84 = arith.constant 0 : index
      %c0_85 = arith.constant 0 : index
      %273 = vector.load %arg7[%c0_84, %c0_85] : memref<8x128xf32, #tpu.memory_space<vmem>>, vector<8x128xf32>
      tpu.vector_store %arg7[%c0_84, %c0_85], %272 {strides = array<i32>} : memref<8x128xf32, #tpu.memory_space<vmem>>, vector<8x128xf32>,
      %c0_86 = arith.constant 0 : index
      %c0_87 = arith.constant 0 : index
      %274 = vector.load %arg4[%c0_86, %c0_87] : memref<8x128xf32, #tpu.memory_space<vmem>>, vector<8x128xf32>
      %c0_88 = arith.constant 0 : index
      %c0_89 = arith.constant 0 : index
      %275 = vector.load %arg8[%c0_88, %c0_89] : memref<8x128xf32, #tpu.memory_space<vmem>>, vector<8x128xf32>
      tpu.vector_store %arg8[%c0_88, %c0_89], %274 {strides = array<i32>} : memref<8x128xf32, #tpu.memory_space<vmem>>, vector<8x128xf32>,
    } else {
    }
    %c0 = arith.constant 0 : index
    %c0_1 = arith.constant 0 : index
    %3 = vector.load %arg7[%c0, %c0_1] : memref<8x128xf32, #tpu.memory_space<vmem>>, vector<8x128xf32>
    %c0_2 = arith.constant 0 : index
    %c0_3 = arith.constant 0 : index
    %4 = vector.load %arg8[%c0_2, %c0_3] : memref<8x128xf32, #tpu.memory_space<vmem>>, vector<8x128xf32>
    %c0_4 = arith.constant 0 : index
    %c0_5 = arith.constant 0 : index
    %5 = vector.load %arg5[%c0_4, %c0_5] : memref<128x512xf32, #tpu.memory_space<vmem>>, vector<128x512xf32>
    %c0_6 = arith.constant 0 : index
    %c0_7 = arith.constant 0 : index
    %c0_8 = arith.constant 0 : index
    %6 = vector.load %arg2[%c0_6, %c0_7, %c0_8] : memref<8x8x512xf32, #tpu.memory_space<vmem>>, vector<1x8x512xf32>
    %7 = vector.shape_cast %6 : vector<1x8x512xf32> to vector<8x512xf32>
    %cst = arith.constant dense<0.000000e+00> : vector<8x512xf32>
    %8 = tpu.matmul %3, %5, %cst {dimension_numbers = #tpu.dot_dimension_numbers<[1], [0], [0], [1], [0, 0, 1, 1], [], []>} : vector<8x128xf32>, vector<128x512xf32>, vector<8x512xf32> -> vector<8x512xf32>
    %9 = arith.addf %7, %8 : vector<8x512xf32>
    %10 = vector.extract_strided_slice %9 {offsets = [0, 0], sizes = [8, 128], strides = [1, 1]} : vector<8x512xf32> to vector<8x128xf32>
    %11 = arith.negf %10 : vector<8x128xf32>
    %12 = math.exp %11 : vector<8x128xf32>
    %cst_9 = arith.constant 1.000000e+00 : f32
    %13 = vector.broadcast %cst_9 : f32 to vector<8x128xf32>
    %14 = arith.addf %13, %12 : vector<8x128xf32>
    %15 = arith.divf %13, %14 : vector<8x128xf32>
    %16 = vector.extract_strided_slice %9 {offsets = [0, 128], sizes = [8, 128], strides = [1, 1]} : vector<8x512xf32> to vector<8x128xf32>
    %17 = arith.negf %16 : vector<8x128xf32>
    %18 = math.exp %17 : vector<8x128xf32>
    %cst_10 = arith.constant 1.000000e+00 : f32
    %19 = vector.broadcast %cst_10 : f32 to vector<8x128xf32>
    %20 = arith.addf %19, %18 : vector<8x128xf32>
    %21 = arith.divf %19, %20 : vector<8x128xf32>
    %22 = vector.extract_strided_slice %9 {offsets = [0, 256], sizes = [8, 128], strides = [1, 1]} : vector<8x512xf32> to vector<8x128xf32>
    %23 = math.tanh %22 : vector<8x128xf32>
    %24 = vector.extract_strided_slice %9 {offsets = [0, 384], sizes = [8, 128], strides = [1, 1]} : vector<8x512xf32> to vector<8x128xf32>
    %25 = arith.negf %24 : vector<8x128xf32>
    %26 = math.exp %25 : vector<8x128xf32>
    %cst_11 = arith.constant 1.000000e+00 : f32
    %27 = vector.broadcast %cst_11 : f32 to vector<8x128xf32>
    %28 = arith.addf %27, %26 : vector<8x128xf32>
    %29 = arith.divf %27, %28 : vector<8x128xf32>
    %30 = arith.mulf %21, %4 : vector<8x128xf32>
    %31 = arith.mulf %15, %23 : vector<8x128xf32>
    %32 = arith.addf %30, %31 : vector<8x128xf32>
    %33 = math.tanh %32 : vector<8x128xf32>
    %34 = arith.mulf %29, %33 : vector<8x128xf32>
    %35 = arith.truncf %34 : vector<8x128xf32> to vector<8x128xbf16>
    %c0_12 = arith.constant 0 : index
    %c0_13 = arith.constant 0 : index
    %c0_14 = arith.constant 0 : index
    %36 = vector.load %arg6[%c0_12, %c0_13, %c0_14] : memref<8x8x128xbf16, #tpu.memory_space<vmem>>, vector<1x8x128xbf16>
    %37 = vector.shape_cast %36 : vector<1x8x128xbf16> to vector<8x128xbf16>
    %38 = vector.shape_cast %35 : vector<8x128xbf16> to vector<1x8x128xbf16>
    tpu.vector_store %arg6[%c0_12, %c0_13, %c0_14], %38 {strides = array<i32>} : memref<8x8x128xbf16, #tpu.memory_space<vmem>>, vector<1x8x128xbf16>,
    %c1 = arith.constant 1 : index
    %c0_15 = arith.constant 0 : index
    %c0_16 = arith.constant 0 : index
    %39 = vector.load %arg2[%c1, %c0_15, %c0_16] : memref<8x8x512xf32, #tpu.memory_space<vmem>>, vector<1x8x512xf32>
    %40 = vector.shape_cast %39 : vector<1x8x512xf32> to vector<8x512xf32>
    %cst_17 = arith.constant dense<0.000000e+00> : vector<8x512xf32>
    %41 = tpu.matmul %34, %5, %cst_17 {dimension_numbers = #tpu.dot_dimension_numbers<[1], [0], [0], [1], [0, 0, 1, 1], [], []>} : vector<8x128xf32>, vector<128x512xf32>, vector<8x512xf32> -> vector<8x512xf32>
    %42 = arith.addf %40, %41 : vector<8x512xf32>
    %43 = vector.extract_strided_slice %42 {offsets = [0, 0], sizes = [8, 128], strides = [1, 1]} : vector<8x512xf32> to vector<8x128xf32>
    %44 = arith.negf %43 : vector<8x128xf32>
    %45 = math.exp %44 : vector<8x128xf32>
    %cst_18 = arith.constant 1.000000e+00 : f32
    %46 = vector.broadcast %cst_18 : f32 to vector<8x128xf32>
    %47 = arith.addf %46, %45 : vector<8x128xf32>
    %48 = arith.divf %46, %47 : vector<8x128xf32>
    %49 = vector.extract_strided_slice %42 {offsets = [0, 128], sizes = [8, 128], strides = [1, 1]} : vector<8x512xf32> to vector<8x128xf32>
    %50 = arith.negf %49 : vector<8x128xf32>
    %51 = math.exp %50 : vector<8x128xf32>
    %cst_19 = arith.constant 1.000000e+00 : f32
    %52 = vector.broadcast %cst_19 : f32 to vector<8x128xf32>
    %53 = arith.addf %52, %51 : vector<8x128xf32>
    %54 = arith.divf %52, %53 : vector<8x128xf32>
    %55 = vector.extract_strided_slice %42 {offsets = [0, 256], sizes = [8, 128], strides = [1, 1]} : vector<8x512xf32> to vector<8x128xf32>
    %56 = math.tanh %55 : vector<8x128xf32>
    %57 = vector.extract_strided_slice %42 {offsets = [0, 384], sizes = [8, 128], strides = [1, 1]} : vector<8x512xf32> to vector<8x128xf32>
    %58 = arith.negf %57 : vector<8x128xf32>
    %59 = math.exp %58 : vector<8x128xf32>
    %cst_20 = arith.constant 1.000000e+00 : f32
    %60 = vector.broadcast %cst_20 : f32 to vector<8x128xf32>
    %61 = arith.addf %60, %59 : vector<8x128xf32>
    %62 = arith.divf %60, %61 : vector<8x128xf32>
    %63 = arith.mulf %54, %32 : vector<8x128xf32>
    %64 = arith.mulf %48, %56 : vector<8x128xf32>
    %65 = arith.addf %63, %64 : vector<8x128xf32>
    %66 = math.tanh %65 : vector<8x128xf32>
    %67 = arith.mulf %62, %66 : vector<8x128xf32>
    %68 = arith.truncf %67 : vector<8x128xf32> to vector<8x128xbf16>
    %c1_21 = arith.constant 1 : index
    %c0_22 = arith.constant 0 : index
    %c0_23 = arith.constant 0 : index
    %69 = vector.load %arg6[%c1_21, %c0_22, %c0_23] : memref<8x8x128xbf16, #tpu.memory_space<vmem>>, vector<1x8x128xbf16>
    %70 = vector.shape_cast %69 : vector<1x8x128xbf16> to vector<8x128xbf16>
    %71 = vector.shape_cast %68 : vector<8x128xbf16> to vector<1x8x128xbf16>
    tpu.vector_store %arg6[%c1_21, %c0_22, %c0_23], %71 {strides = array<i32>} : memref<8x8x128xbf16, #tpu.memory_space<vmem>>, vector<1x8x128xbf16>,
    %c2 = arith.constant 2 : index
    %c0_24 = arith.constant 0 : index
    %c0_25 = arith.constant 0 : index
    %72 = vector.load %arg2[%c2, %c0_24, %c0_25] : memref<8x8x512xf32, #tpu.memory_space<vmem>>, vector<1x8x512xf32>
    %73 = vector.shape_cast %72 : vector<1x8x512xf32> to vector<8x512xf32>
    %cst_26 = arith.constant dense<0.000000e+00> : vector<8x512xf32>
    %74 = tpu.matmul %67, %5, %cst_26 {dimension_numbers = #tpu.dot_dimension_numbers<[1], [0], [0], [1], [0, 0, 1, 1], [], []>} : vector<8x128xf32>, vector<128x512xf32>, vector<8x512xf32> -> vector<8x512xf32>
    %75 = arith.addf %73, %74 : vector<8x512xf32>
    %76 = vector.extract_strided_slice %75 {offsets = [0, 0], sizes = [8, 128], strides = [1, 1]} : vector<8x512xf32> to vector<8x128xf32>
    %77 = arith.negf %76 : vector<8x128xf32>
    %78 = math.exp %77 : vector<8x128xf32>
    %cst_27 = arith.constant 1.000000e+00 : f32
    %79 = vector.broadcast %cst_27 : f32 to vector<8x128xf32>
    %80 = arith.addf %79, %78 : vector<8x128xf32>
    %81 = arith.divf %79, %80 : vector<8x128xf32>
    %82 = vector.extract_strided_slice %75 {offsets = [0, 128], sizes = [8, 128], strides = [1, 1]} : vector<8x512xf32> to vector<8x128xf32>
    %83 = arith.negf %82 : vector<8x128xf32>
    %84 = math.exp %83 : vector<8x128xf32>
    %cst_28 = arith.constant 1.000000e+00 : f32
    %85 = vector.broadcast %cst_28 : f32 to vector<8x128xf32>
    %86 = arith.addf %85, %84 : vector<8x128xf32>
    %87 = arith.divf %85, %86 : vector<8x128xf32>
    %88 = vector.extract_strided_slice %75 {offsets = [0, 256], sizes = [8, 128], strides = [1, 1]} : vector<8x512xf32> to vector<8x128xf32>
    %89 = math.tanh %88 : vector<8x128xf32>
    %90 = vector.extract_strided_slice %75 {offsets = [0, 384], sizes = [8, 128], strides = [1, 1]} : vector<8x512xf32> to vector<8x128xf32>
    %91 = arith.negf %90 : vector<8x128xf32>
    %92 = math.exp %91 : vector<8x128xf32>
    %cst_29 = arith.constant 1.000000e+00 : f32
    %93 = vector.broadcast %cst_29 : f32 to vector<8x128xf32>
    %94 = arith.addf %93, %92 : vector<8x128xf32>
    %95 = arith.divf %93, %94 : vector<8x128xf32>
    %96 = arith.mulf %87, %65 : vector<8x128xf32>
    %97 = arith.mulf %81, %89 : vector<8x128xf32>
    %98 = arith.addf %96, %97 : vector<8x128xf32>
    %99 = math.tanh %98 : vector<8x128xf32>
    %100 = arith.mulf %95, %99 : vector<8x128xf32>
    %101 = arith.truncf %100 : vector<8x128xf32> to vector<8x128xbf16>
    %c2_30 = arith.constant 2 : index
    %c0_31 = arith.constant 0 : index
    %c0_32 = arith.constant 0 : index
    %102 = vector.load %arg6[%c2_30, %c0_31, %c0_32] : memref<8x8x128xbf16, #tpu.memory_space<vmem>>, vector<1x8x128xbf16>
    %103 = vector.shape_cast %102 : vector<1x8x128xbf16> to vector<8x128xbf16>
    %104 = vector.shape_cast %101 : vector<8x128xbf16> to vector<1x8x128xbf16>
    tpu.vector_store %arg6[%c2_30, %c0_31, %c0_32], %104 {strides = array<i32>} : memref<8x8x128xbf16, #tpu.memory_space<vmem>>, vector<1x8x128xbf16>,
    %c3 = arith.constant 3 : index
    %c0_33 = arith.constant 0 : index
    %c0_34 = arith.constant 0 : index
    %105 = vector.load %arg2[%c3, %c0_33, %c0_34] : memref<8x8x512xf32, #tpu.memory_space<vmem>>, vector<1x8x512xf32>
    %106 = vector.shape_cast %105 : vector<1x8x512xf32> to vector<8x512xf32>
    %cst_35 = arith.constant dense<0.000000e+00> : vector<8x512xf32>
    %107 = tpu.matmul %100, %5, %cst_35 {dimension_numbers = #tpu.dot_dimension_numbers<[1], [0], [0], [1], [0, 0, 1, 1], [], []>} : vector<8x128xf32>, vector<128x512xf32>, vector<8x512xf32> -> vector<8x512xf32>
    %108 = arith.addf %106, %107 : vector<8x512xf32>
    %109 = vector.extract_strided_slice %108 {offsets = [0, 0], sizes = [8, 128], strides = [1, 1]} : vector<8x512xf32> to vector<8x128xf32>
    %110 = arith.negf %109 : vector<8x128xf32>
    %111 = math.exp %110 : vector<8x128xf32>
    %cst_36 = arith.constant 1.000000e+00 : f32
    %112 = vector.broadcast %cst_36 : f32 to vector<8x128xf32>
    %113 = arith.addf %112, %111 : vector<8x128xf32>
    %114 = arith.divf %112, %113 : vector<8x128xf32>
    %115 = vector.extract_strided_slice %108 {offsets = [0, 128], sizes = [8, 128], strides = [1, 1]} : vector<8x512xf32> to vector<8x128xf32>
    %116 = arith.negf %115 : vector<8x128xf32>
    %117 = math.exp %116 : vector<8x128xf32>
    %cst_37 = arith.constant 1.000000e+00 : f32
    %118 = vector.broadcast %cst_37 : f32 to vector<8x128xf32>
    %119 = arith.addf %118, %117 : vector<8x128xf32>
    %120 = arith.divf %118, %119 : vector<8x128xf32>
    %121 = vector.extract_strided_slice %108 {offsets = [0, 256], sizes = [8, 128], strides = [1, 1]} : vector<8x512xf32> to vector<8x128xf32>
    %122 = math.tanh %121 : vector<8x128xf32>
    %123 = vector.extract_strided_slice %108 {offsets = [0, 384], sizes = [8, 128], strides = [1, 1]} : vector<8x512xf32> to vector<8x128xf32>
    %124 = arith.negf %123 : vector<8x128xf32>
    %125 = math.exp %124 : vector<8x128xf32>
    %cst_38 = arith.constant 1.000000e+00 : f32
    %126 = vector.broadcast %cst_38 : f32 to vector<8x128xf32>
    %127 = arith.addf %126, %125 : vector<8x128xf32>
    %128 = arith.divf %126, %127 : vector<8x128xf32>
    %129 = arith.mulf %120, %98 : vector<8x128xf32>
    %130 = arith.mulf %114, %122 : vector<8x128xf32>
    %131 = arith.addf %129, %130 : vector<8x128xf32>
    %132 = math.tanh %131 : vector<8x128xf32>
    %133 = arith.mulf %128, %132 : vector<8x128xf32>
    %134 = arith.truncf %133 : vector<8x128xf32> to vector<8x128xbf16>
    %c3_39 = arith.constant 3 : index
    %c0_40 = arith.constant 0 : index
    %c0_41 = arith.constant 0 : index
    %135 = vector.load %arg6[%c3_39, %c0_40, %c0_41] : memref<8x8x128xbf16, #tpu.memory_space<vmem>>, vector<1x8x128xbf16>
    %136 = vector.shape_cast %135 : vector<1x8x128xbf16> to vector<8x128xbf16>
    %137 = vector.shape_cast %134 : vector<8x128xbf16> to vector<1x8x128xbf16>
    tpu.vector_store %arg6[%c3_39, %c0_40, %c0_41], %137 {strides = array<i32>} : memref<8x8x128xbf16, #tpu.memory_space<vmem>>, vector<1x8x128xbf16>,
    %c4 = arith.constant 4 : index
    %c0_42 = arith.constant 0 : index
    %c0_43 = arith.constant 0 : index
    %138 = vector.load %arg2[%c4, %c0_42, %c0_43] : memref<8x8x512xf32, #tpu.memory_space<vmem>>, vector<1x8x512xf32>
    %139 = vector.shape_cast %138 : vector<1x8x512xf32> to vector<8x512xf32>
    %cst_44 = arith.constant dense<0.000000e+00> : vector<8x512xf32>
    %140 = tpu.matmul %133, %5, %cst_44 {dimension_numbers = #tpu.dot_dimension_numbers<[1], [0], [0], [1], [0, 0, 1, 1], [], []>} : vector<8x128xf32>, vector<128x512xf32>, vector<8x512xf32> -> vector<8x512xf32>
    %141 = arith.addf %139, %140 : vector<8x512xf32>
    %142 = vector.extract_strided_slice %141 {offsets = [0, 0], sizes = [8, 128], strides = [1, 1]} : vector<8x512xf32> to vector<8x128xf32>
    %143 = arith.negf %142 : vector<8x128xf32>
    %144 = math.exp %143 : vector<8x128xf32>
    %cst_45 = arith.constant 1.000000e+00 : f32
    %145 = vector.broadcast %cst_45 : f32 to vector<8x128xf32>
    %146 = arith.addf %145, %144 : vector<8x128xf32>
    %147 = arith.divf %145, %146 : vector<8x128xf32>
    %148 = vector.extract_strided_slice %141 {offsets = [0, 128], sizes = [8, 128], strides = [1, 1]} : vector<8x512xf32> to vector<8x128xf32>
    %149 = arith.negf %148 : vector<8x128xf32>
    %150 = math.exp %149 : vector<8x128xf32>
    %cst_46 = arith.constant 1.000000e+00 : f32
    %151 = vector.broadcast %cst_46 : f32 to vector<8x128xf32>
    %152 = arith.addf %151, %150 : vector<8x128xf32>
    %153 = arith.divf %151, %152 : vector<8x128xf32>
    %154 = vector.extract_strided_slice %141 {offsets = [0, 256], sizes = [8, 128], strides = [1, 1]} : vector<8x512xf32> to vector<8x128xf32>
    %155 = math.tanh %154 : vector<8x128xf32>
    %156 = vector.extract_strided_slice %141 {offsets = [0, 384], sizes = [8, 128], strides = [1, 1]} : vector<8x512xf32> to vector<8x128xf32>
    %157 = arith.negf %156 : vector<8x128xf32>
    %158 = math.exp %157 : vector<8x128xf32>
    %cst_47 = arith.constant 1.000000e+00 : f32
    %159 = vector.broadcast %cst_47 : f32 to vector<8x128xf32>
    %160 = arith.addf %159, %158 : vector<8x128xf32>
    %161 = arith.divf %159, %160 : vector<8x128xf32>
    %162 = arith.mulf %153, %131 : vector<8x128xf32>
    %163 = arith.mulf %147, %155 : vector<8x128xf32>
    %164 = arith.addf %162, %163 : vector<8x128xf32>
    %165 = math.tanh %164 : vector<8x128xf32>
    %166 = arith.mulf %161, %165 : vector<8x128xf32>
    %167 = arith.truncf %166 : vector<8x128xf32> to vector<8x128xbf16>
    %c4_48 = arith.constant 4 : index
    %c0_49 = arith.constant 0 : index
    %c0_50 = arith.constant 0 : index
    %168 = vector.load %arg6[%c4_48, %c0_49, %c0_50] : memref<8x8x128xbf16, #tpu.memory_space<vmem>>, vector<1x8x128xbf16>
    %169 = vector.shape_cast %168 : vector<1x8x128xbf16> to vector<8x128xbf16>
    %170 = vector.shape_cast %167 : vector<8x128xbf16> to vector<1x8x128xbf16>
    tpu.vector_store %arg6[%c4_48, %c0_49, %c0_50], %170 {strides = array<i32>} : memref<8x8x128xbf16, #tpu.memory_space<vmem>>, vector<1x8x128xbf16>,
    %c5 = arith.constant 5 : index
    %c0_51 = arith.constant 0 : index
    %c0_52 = arith.constant 0 : index
    %171 = vector.load %arg2[%c5, %c0_51, %c0_52] : memref<8x8x512xf32, #tpu.memory_space<vmem>>, vector<1x8x512xf32>
    %172 = vector.shape_cast %171 : vector<1x8x512xf32> to vector<8x512xf32>
    %cst_53 = arith.constant dense<0.000000e+00> : vector<8x512xf32>
    %173 = tpu.matmul %166, %5, %cst_53 {dimension_numbers = #tpu.dot_dimension_numbers<[1], [0], [0], [1], [0, 0, 1, 1], [], []>} : vector<8x128xf32>, vector<128x512xf32>, vector<8x512xf32> -> vector<8x512xf32>
    %174 = arith.addf %172, %173 : vector<8x512xf32>
    %175 = vector.extract_strided_slice %174 {offsets = [0, 0], sizes = [8, 128], strides = [1, 1]} : vector<8x512xf32> to vector<8x128xf32>
    %176 = arith.negf %175 : vector<8x128xf32>
    %177 = math.exp %176 : vector<8x128xf32>
    %cst_54 = arith.constant 1.000000e+00 : f32
    %178 = vector.broadcast %cst_54 : f32 to vector<8x128xf32>
    %179 = arith.addf %178, %177 : vector<8x128xf32>
    %180 = arith.divf %178, %179 : vector<8x128xf32>
    %181 = vector.extract_strided_slice %174 {offsets = [0, 128], sizes = [8, 128], strides = [1, 1]} : vector<8x512xf32> to vector<8x128xf32>
    %182 = arith.negf %181 : vector<8x128xf32>
    %183 = math.exp %182 : vector<8x128xf32>
    %cst_55 = arith.constant 1.000000e+00 : f32
    %184 = vector.broadcast %cst_55 : f32 to vector<8x128xf32>
    %185 = arith.addf %184, %183 : vector<8x128xf32>
    %186 = arith.divf %184, %185 : vector<8x128xf32>
    %187 = vector.extract_strided_slice %174 {offsets = [0, 256], sizes = [8, 128], strides = [1, 1]} : vector<8x512xf32> to vector<8x128xf32>
    %188 = math.tanh %187 : vector<8x128xf32>
    %189 = vector.extract_strided_slice %174 {offsets = [0, 384], sizes = [8, 128], strides = [1, 1]} : vector<8x512xf32> to vector<8x128xf32>
    %190 = arith.negf %189 : vector<8x128xf32>
    %191 = math.exp %190 : vector<8x128xf32>
    %cst_56 = arith.constant 1.000000e+00 : f32
    %192 = vector.broadcast %cst_56 : f32 to vector<8x128xf32>
    %193 = arith.addf %192, %191 : vector<8x128xf32>
    %194 = arith.divf %192, %193 : vector<8x128xf32>
    %195 = arith.mulf %186, %164 : vector<8x128xf32>
    %196 = arith.mulf %180, %188 : vector<8x128xf32>
    %197 = arith.addf %195, %196 : vector<8x128xf32>
    %198 = math.tanh %197 : vector<8x128xf32>
    %199 = arith.mulf %194, %198 : vector<8x128xf32>
    %200 = arith.truncf %199 : vector<8x128xf32> to vector<8x128xbf16>
    %c5_57 = arith.constant 5 : index
    %c0_58 = arith.constant 0 : index
    %c0_59 = arith.constant 0 : index
    %201 = vector.load %arg6[%c5_57, %c0_58, %c0_59] : memref<8x8x128xbf16, #tpu.memory_space<vmem>>, vector<1x8x128xbf16>
    %202 = vector.shape_cast %201 : vector<1x8x128xbf16> to vector<8x128xbf16>
    %203 = vector.shape_cast %200 : vector<8x128xbf16> to vector<1x8x128xbf16>
    tpu.vector_store %arg6[%c5_57, %c0_58, %c0_59], %203 {strides = array<i32>} : memref<8x8x128xbf16, #tpu.memory_space<vmem>>, vector<1x8x128xbf16>,
    %c6 = arith.constant 6 : index
    %c0_60 = arith.constant 0 : index
    %c0_61 = arith.constant 0 : index
    %204 = vector.load %arg2[%c6, %c0_60, %c0_61] : memref<8x8x512xf32, #tpu.memory_space<vmem>>, vector<1x8x512xf32>
    %205 = vector.shape_cast %204 : vector<1x8x512xf32> to vector<8x512xf32>
    %cst_62 = arith.constant dense<0.000000e+00> : vector<8x512xf32>
    %206 = tpu.matmul %199, %5, %cst_62 {dimension_numbers = #tpu.dot_dimension_numbers<[1], [0], [0], [1], [0, 0, 1, 1], [], []>} : vector<8x128xf32>, vector<128x512xf32>, vector<8x512xf32> -> vector<8x512xf32>
    %207 = arith.addf %205, %206 : vector<8x512xf32>
    %208 = vector.extract_strided_slice %207 {offsets = [0, 0], sizes = [8, 128], strides = [1, 1]} : vector<8x512xf32> to vector<8x128xf32>
    %209 = arith.negf %208 : vector<8x128xf32>
    %210 = math.exp %209 : vector<8x128xf32>
    %cst_63 = arith.constant 1.000000e+00 : f32
    %211 = vector.broadcast %cst_63 : f32 to vector<8x128xf32>
    %212 = arith.addf %211, %210 : vector<8x128xf32>
    %213 = arith.divf %211, %212 : vector<8x128xf32>
    %214 = vector.extract_strided_slice %207 {offsets = [0, 128], sizes = [8, 128], strides = [1, 1]} : vector<8x512xf32> to vector<8x128xf32>
    %215 = arith.negf %214 : vector<8x128xf32>
    %216 = math.exp %215 : vector<8x128xf32>
    %cst_64 = arith.constant 1.000000e+00 : f32
    %217 = vector.broadcast %cst_64 : f32 to vector<8x128xf32>
    %218 = arith.addf %217, %216 : vector<8x128xf32>
    %219 = arith.divf %217, %218 : vector<8x128xf32>
    %220 = vector.extract_strided_slice %207 {offsets = [0, 256], sizes = [8, 128], strides = [1, 1]} : vector<8x512xf32> to vector<8x128xf32>
    %221 = math.tanh %220 : vector<8x128xf32>
    %222 = vector.extract_strided_slice %207 {offsets = [0, 384], sizes = [8, 128], strides = [1, 1]} : vector<8x512xf32> to vector<8x128xf32>
    %223 = arith.negf %222 : vector<8x128xf32>
    %224 = math.exp %223 : vector<8x128xf32>
    %cst_65 = arith.constant 1.000000e+00 : f32
    %225 = vector.broadcast %cst_65 : f32 to vector<8x128xf32>
    %226 = arith.addf %225, %224 : vector<8x128xf32>
    %227 = arith.divf %225, %226 : vector<8x128xf32>
    %228 = arith.mulf %219, %197 : vector<8x128xf32>
    %229 = arith.mulf %213, %221 : vector<8x128xf32>
    %230 = arith.addf %228, %229 : vector<8x128xf32>
    %231 = math.tanh %230 : vector<8x128xf32>
    %232 = arith.mulf %227, %231 : vector<8x128xf32>
    %233 = arith.truncf %232 : vector<8x128xf32> to vector<8x128xbf16>
    %c6_66 = arith.constant 6 : index
    %c0_67 = arith.constant 0 : index
    %c0_68 = arith.constant 0 : index
    %234 = vector.load %arg6[%c6_66, %c0_67, %c0_68] : memref<8x8x128xbf16, #tpu.memory_space<vmem>>, vector<1x8x128xbf16>
    %235 = vector.shape_cast %234 : vector<1x8x128xbf16> to vector<8x128xbf16>
    %236 = vector.shape_cast %233 : vector<8x128xbf16> to vector<1x8x128xbf16>
    tpu.vector_store %arg6[%c6_66, %c0_67, %c0_68], %236 {strides = array<i32>} : memref<8x8x128xbf16, #tpu.memory_space<vmem>>, vector<1x8x128xbf16>,
    %c7 = arith.constant 7 : index
    %c0_69 = arith.constant 0 : index
    %c0_70 = arith.constant 0 : index
    %237 = vector.load %arg2[%c7, %c0_69, %c0_70] : memref<8x8x512xf32, #tpu.memory_space<vmem>>, vector<1x8x512xf32>
    %238 = vector.shape_cast %237 : vector<1x8x512xf32> to vector<8x512xf32>
    %cst_71 = arith.constant dense<0.000000e+00> : vector<8x512xf32>
    %239 = tpu.matmul %232, %5, %cst_71 {dimension_numbers = #tpu.dot_dimension_numbers<[1], [0], [0], [1], [0, 0, 1, 1], [], []>} : vector<8x128xf32>, vector<128x512xf32>, vector<8x512xf32> -> vector<8x512xf32>
    %240 = arith.addf %238, %239 : vector<8x512xf32>
    %241 = vector.extract_strided_slice %240 {offsets = [0, 0], sizes = [8, 128], strides = [1, 1]} : vector<8x512xf32> to vector<8x128xf32>
    %242 = arith.negf %241 : vector<8x128xf32>
    %243 = math.exp %242 : vector<8x128xf32>
    %cst_72 = arith.constant 1.000000e+00 : f32
    %244 = vector.broadcast %cst_72 : f32 to vector<8x128xf32>
    %245 = arith.addf %244, %243 : vector<8x128xf32>
    %246 = arith.divf %244, %245 : vector<8x128xf32>
    %247 = vector.extract_strided_slice %240 {offsets = [0, 128], sizes = [8, 128], strides = [1, 1]} : vector<8x512xf32> to vector<8x128xf32>
    %248 = arith.negf %247 : vector<8x128xf32>
    %249 = math.exp %248 : vector<8x128xf32>
    %cst_73 = arith.constant 1.000000e+00 : f32
    %250 = vector.broadcast %cst_73 : f32 to vector<8x128xf32>
    %251 = arith.addf %250, %249 : vector<8x128xf32>
    %252 = arith.divf %250, %251 : vector<8x128xf32>
    %253 = vector.extract_strided_slice %240 {offsets = [0, 256], sizes = [8, 128], strides = [1, 1]} : vector<8x512xf32> to vector<8x128xf32>
    %254 = math.tanh %253 : vector<8x128xf32>
    %255 = vector.extract_strided_slice %240 {offsets = [0, 384], sizes = [8, 128], strides = [1, 1]} : vector<8x512xf32> to vector<8x128xf32>
    %256 = arith.negf %255 : vector<8x128xf32>
    %257 = math.exp %256 : vector<8x128xf32>
    %cst_74 = arith.constant 1.000000e+00 : f32
    %258 = vector.broadcast %cst_74 : f32 to vector<8x128xf32>
    %259 = arith.addf %258, %257 : vector<8x128xf32>
    %260 = arith.divf %258, %259 : vector<8x128xf32>
    %261 = arith.mulf %252, %230 : vector<8x128xf32>
    %262 = arith.mulf %246, %254 : vector<8x128xf32>
    %263 = arith.addf %261, %262 : vector<8x128xf32>
    %264 = math.tanh %263 : vector<8x128xf32>
    %265 = arith.mulf %260, %264 : vector<8x128xf32>
    %266 = arith.truncf %265 : vector<8x128xf32> to vector<8x128xbf16>
    %c7_75 = arith.constant 7 : index
    %c0_76 = arith.constant 0 : index
    %c0_77 = arith.constant 0 : index
    %267 = vector.load %arg6[%c7_75, %c0_76, %c0_77] : memref<8x8x128xbf16, #tpu.memory_space<vmem>>, vector<1x8x128xbf16>
    %268 = vector.shape_cast %267 : vector<1x8x128xbf16> to vector<8x128xbf16>
    %269 = vector.shape_cast %266 : vector<8x128xbf16> to vector<1x8x128xbf16>
    tpu.vector_store %arg6[%c7_75, %c0_76, %c0_77], %269 {strides = array<i32>} : memref<8x8x128xbf16, #tpu.memory_space<vmem>>, vector<1x8x128xbf16>,
    %c0_78 = arith.constant 0 : index
    %c0_79 = arith.constant 0 : index
    %270 = vector.load %arg7[%c0_78, %c0_79] : memref<8x128xf32, #tpu.memory_space<vmem>>, vector<8x128xf32>
    tpu.vector_store %arg7[%c0_78, %c0_79], %265 {strides = array<i32>} : memref<8x128xf32, #tpu.memory_space<vmem>>, vector<8x128xf32>,
    %c0_80 = arith.constant 0 : index
    %c0_81 = arith.constant 0 : index
    %271 = vector.load %arg8[%c0_80, %c0_81] : memref<8x128xf32, #tpu.memory_space<vmem>>, vector<8x128xf32>
    tpu.vector_store %arg8[%c0_80, %c0_81], %263 {strides = array<i32>} : memref<8x128xf32, #tpu.memory_space<vmem>>, vector<8x128xf32>,
    return
  }
  func.func @transform_0(%arg0: i32, %arg1: i32) -> (i32, i32, i32) {
    %c0_i32 = arith.constant 0 : i32
    %c0_i32_0 = arith.constant 0 : i32
    return %arg1, %arg0, %c0_i32 : i32, i32, i32
  }
  func.func @transform_1(%arg0: i32, %arg1: i32) -> (i32, i32) {
    %c0_i32 = arith.constant 0 : i32
    %c0_i32_0 = arith.constant 0 : i32
    return %arg0, %c0_i32 : i32, i32
  }
  func.func @transform_2(%arg0: i32, %arg1: i32) -> (i32, i32) {
    %c0_i32 = arith.constant 0 : i32
    %c0_i32_0 = arith.constant 0 : i32
    return %arg0, %c0_i32 : i32, i32
  }
  func.func @transform_3(%arg0: i32, %arg1: i32) -> (i32, i32) {
    %c0_i32 = arith.constant 0 : i32
    %c0_i32_0 = arith.constant 0 : i32
    %c0_i32_1 = arith.constant 0 : i32
    return %c0_i32, %c0_i32_0 : i32, i32
  }
  func.func @transform_4(%arg0: i32, %arg1: i32) -> (i32, i32, i32) {
    %c0_i32 = arith.constant 0 : i32
    %c0_i32_0 = arith.constant 0 : i32
    return %arg1, %arg0, %c0_i32 : i32, i32, i32
  }
  func.func @transform_5(%arg0: i32, %arg1: i32) -> (i32, i32) {
    %c0_i32 = arith.constant 0 : i32
    %c0_i32_0 = arith.constant 0 : i32
    return %arg0, %c0_i32 : i32, i32
  }
  func.func @transform_6(%arg0: i32, %arg1: i32) -> (i32, i32) {
    %c0_i32 = arith.constant 0 : i32
    %c0_i32_0 = arith.constant 0 : i32
    return %arg0, %c0_i32 : i32, i32
  }
}

module attributes {stable_mosaic.version = 11 : i64} {
  func.func @_matmul_bias_kernel(%arg0: i32, %arg1: memref<64x32xf32, #tpu.memory_space<vmem>>, %arg2: memref<32x512xf32, #tpu.memory_space<vmem>>, %arg3: memref<1x512xf32, #tpu.memory_space<vmem>>, %arg4: memref<64x512xf32, #tpu.memory_space<vmem>>) attributes {dimension_semantics = [#tpu.dimension_semantics<parallel>], iteration_bounds = array<i64: 1>, scalar_prefetch = 0 : i64, scratch_operands = 0 : i64, tpu.core_type = #tpu.core_type<tc>, window_params = [{transform_indices = @transform_0, window_bounds = array<i64: 64, 32>}, {pipeline_mode = #tpu.pipeline_mode<synchronous>, transform_indices = @transform_1, window_bounds = array<i64: 32, 512>}, {pipeline_mode = #tpu.pipeline_mode<synchronous>, transform_indices = @transform_2, window_bounds = array<i64: 1, 512>}, {transform_indices = @transform_3, window_bounds = array<i64: 64, 512>}]} {
    %c0 = arith.constant 0 : index
    %c0_0 = arith.constant 0 : index
    %0 = vector.load %arg1[%c0, %c0_0] : memref<64x32xf32, #tpu.memory_space<vmem>>, vector<64x32xf32>
    %c0_1 = arith.constant 0 : index
    %c0_2 = arith.constant 0 : index
    %1 = vector.load %arg2[%c0_1, %c0_2] : memref<32x512xf32, #tpu.memory_space<vmem>>, vector<32x512xf32>
    %cst = arith.constant dense<0.000000e+00> : vector<64x512xf32>
    %2 = tpu.matmul %0, %1, %cst {dimension_numbers = #tpu.dot_dimension_numbers<[1], [0], [0], [1], [0, 0, 1, 1], [], []>} : vector<64x32xf32>, vector<32x512xf32>, vector<64x512xf32> -> vector<64x512xf32>
    %c0_3 = arith.constant 0 : index
    %c0_4 = arith.constant 0 : index
    %3 = vector.load %arg3[%c0_3, %c0_4] : memref<1x512xf32, #tpu.memory_space<vmem>>, vector<1x512xf32>
    %4 = vector.broadcast %3 : vector<1x512xf32> to vector<64x512xf32>
    %5 = arith.addf %2, %4 : vector<64x512xf32>
    %c0_5 = arith.constant 0 : index
    %c0_6 = arith.constant 0 : index
    %6 = vector.load %arg4[%c0_5, %c0_6] : memref<64x512xf32, #tpu.memory_space<vmem>>, vector<64x512xf32>
    tpu.vector_store %arg4[%c0_5, %c0_6], %5 {strides = array<i32>} : memref<64x512xf32, #tpu.memory_space<vmem>>, vector<64x512xf32>,
    return
  }
  func.func @transform_0(%arg0: i32) -> (i32, i32) {
    %c0_i32 = arith.constant 0 : i32
    %c0_i32_0 = arith.constant 0 : i32
    return %arg0, %c0_i32 : i32, i32
  }
  func.func @transform_1(%arg0: i32) -> (i32, i32) {
    %c0_i32 = arith.constant 0 : i32
    %c0_i32_0 = arith.constant 0 : i32
    %c0_i32_1 = arith.constant 0 : i32
    return %c0_i32, %c0_i32_0 : i32, i32
  }
  func.func @transform_2(%arg0: i32) -> (i32, i32) {
    %c0_i32 = arith.constant 0 : i32
    %c0_i32_0 = arith.constant 0 : i32
    %c0_i32_1 = arith.constant 0 : i32
    return %c0_i32, %c0_i32_0 : i32, i32
  }
  func.func @transform_3(%arg0: i32) -> (i32, i32) {
    %c0_i32 = arith.constant 0 : i32
    %c0_i32_0 = arith.constant 0 : i32
    return %arg0, %c0_i32 : i32, i32
  }
}

module attributes {stable_mosaic.version = 11 : i64} {
  func.func @_matmul_bias_kernel(%arg0: i32, %arg1: i32, %arg2: memref<64x128xbf16, #tpu.memory_space<vmem>>, %arg3: memref<128x128xbf16, #tpu.memory_space<vmem>>, %arg4: memref<1x128xf32, #tpu.memory_space<vmem>>, %arg5: memref<64x128xf32, #tpu.memory_space<vmem>>) attributes {dimension_semantics = [#tpu.dimension_semantics<parallel>, #tpu.dimension_semantics<parallel>], iteration_bounds = array<i64: 1, 1>, scalar_prefetch = 0 : i64, scratch_operands = 0 : i64, tpu.core_type = #tpu.core_type<tc>, window_params = [{transform_indices = @transform_0, window_bounds = array<i64: 64, 128>}, {transform_indices = @transform_1, window_bounds = array<i64: 128, 128>}, {transform_indices = @transform_2, window_bounds = array<i64: 1, 128>}, {transform_indices = @transform_3, window_bounds = array<i64: 64, 128>}]} {
    %c0 = arith.constant 0 : index
    %c0_0 = arith.constant 0 : index
    %0 = vector.load %arg2[%c0, %c0_0] : memref<64x128xbf16, #tpu.memory_space<vmem>>, vector<64x128xbf16>
    %c0_1 = arith.constant 0 : index
    %c0_2 = arith.constant 0 : index
    %1 = vector.load %arg3[%c0_1, %c0_2] : memref<128x128xbf16, #tpu.memory_space<vmem>>, vector<128x128xbf16>
    %cst = arith.constant dense<0.000000e+00> : vector<64x128xf32>
    %2 = tpu.matmul %0, %1, %cst {dimension_numbers = #tpu.dot_dimension_numbers<[1], [0], [0], [1], [0, 0, 1, 1], [], []>} : vector<64x128xbf16>, vector<128x128xbf16>, vector<64x128xf32> -> vector<64x128xf32>
    %c0_3 = arith.constant 0 : index
    %c0_4 = arith.constant 0 : index
    %3 = vector.load %arg4[%c0_3, %c0_4] : memref<1x128xf32, #tpu.memory_space<vmem>>, vector<1x128xf32>
    %4 = vector.broadcast %3 : vector<1x128xf32> to vector<64x128xf32>
    %5 = arith.addf %2, %4 : vector<64x128xf32>
    %c0_5 = arith.constant 0 : index
    %c0_6 = arith.constant 0 : index
    %6 = vector.load %arg5[%c0_5, %c0_6] : memref<64x128xf32, #tpu.memory_space<vmem>>, vector<64x128xf32>
    tpu.vector_store %arg5[%c0_5, %c0_6], %5 {strides = array<i32>} : memref<64x128xf32, #tpu.memory_space<vmem>>, vector<64x128xf32>,
    return
  }
  func.func @transform_0(%arg0: i32, %arg1: i32) -> (i32, i32) {
    %c0_i32 = arith.constant 0 : i32
    %c0_i32_0 = arith.constant 0 : i32
    return %arg1, %c0_i32 : i32, i32
  }
  func.func @transform_1(%arg0: i32, %arg1: i32) -> (i32, i32) {
    %c0_i32 = arith.constant 0 : i32
    %c0_i32_0 = arith.constant 0 : i32
    return %c0_i32, %arg0 : i32, i32
  }
  func.func @transform_2(%arg0: i32, %arg1: i32) -> (i32, i32) {
    %c0_i32 = arith.constant 0 : i32
    %c0_i32_0 = arith.constant 0 : i32
    return %c0_i32, %arg0 : i32, i32
  }
  func.func @transform_3(%arg0: i32, %arg1: i32) -> (i32, i32) {
    %c0_i32 = arith.constant 0 : i32
    return %arg1, %arg0 : i32, i32
  }
}

</mosaic_0001>

<bundles_post_ra>
// kernel: rnn_forward.3
= control target key start
LH: loop header
LB: loop body
LE: loop exit
PB: predicated region body
PF: predicated region fallthrough
CT: control target
= control target key end

     0   :  { %v380_v3 = vmov 0.0   ;;  %vm60_vm0 = vcmask 261120   ;;  %v40_v33 = vlaneseq  ;;  %s644_s1 = inlined_call_operand.vmem [shape: f32[32,512], index: 1, kind: input, shape index: {}]   ;;  %s645_s0 = inlined_call_operand.vmem [shape: f32[64,32], index: 0, kind: input, shape index: {}]   ;;  %s646_s2 = inlined_call_operand.vmem [shape: f32[1,512], index: 2, kind: input, shape index: {}]   ;;  %s647_s3 = inlined_call_operand.vmem [shape: f32[64,512], index: 3, kind: output, shape index: {}]  }
   0x1   :  { %v23_v0 = vld [vmem:[%s644_s1 + $0x8] sm:$0xff]  ;;  %v25_v2 = vld [vmem:[%s644_s1 + $0x18] sm:$0xff]  ;;  %149 = vmatprep.mubr.f32.mxu0 %v380_v3  ;;  %262 = vmatprep.mubr.f32.mxu1 %v380_v3  ;;  %v22_v6 = vld [vmem:[%s644_s1] sm:$0xff] }
   0x2   :  { %v27_v1 = vld [vmem:[%s644_s1 + $0x28] sm:$0xff]  ;;  %v29_v5 = vld [vmem:[%s644_s1 + $0x38] sm:$0xff]  ;;  %v26_v7 = vld [vmem:[%s644_s1 + $0x20] sm:$0xff]  ;;  %v41_v34 = vshrl.u32 %v40_v33, 7 }
   0x3   :  { %v363_v4 = vpack.c.bf16 %v27_v1, %v23_v0  ;;  %v371_v8 = vpack.c.bf16 %v29_v5, %v25_v2  ;;  %v365_v9 = vpack.c.bf16 %v26_v7, %v22_v6  ;;  %v24_v10 = vld [vmem:[%s644_s1 + $0x10] sm:$0xff]  ;;  %v31_v12 = vld [vmem:[%s644_s1 + $0x48] sm:$0xff]  ;;  %v33_v15 = vld [vmem:[%s644_s1 + $0x58] sm:$0xff] }
   0x4   :  { %v28_v11 = vld [vmem:[%s644_s1 + $0x30] sm:$0xff]  ;;  %v35_v14 = vld [vmem:[%s644_s1 + $0x68] sm:$0xff]  ;;  %v37_v16 = vld [vmem:[%s644_s1 + $0x78] sm:$0xff]  ;;  %v42_v35 = vsub.s32 0, %v41_v34  ;;  %v50_v37 = vsub.s32 2, %v41_v34  ;;  %v46_v38 = vsub.s32 1, %v41_v34 }
   0x5   :  { %364 = vmatprep.subr.bf16.mxu0 %v363_v4  ;;  %v373_v13 = vpack.c.bf16 %v28_v11, %v24_v10  ;;  %372 = vmatprep.subr.bf16.mxu1 %v371_v8  ;;  %v367_v17 = vpack.c.bf16 %v35_v14, %v31_v12  ;;  %v375_v18 = vpack.c.bf16 %v37_v16, %v33_v15  ;;  %v30_v19 = vld [vmem:[%s644_s1 + $0x40] sm:$0xff]  ;;  %v32_v21 = vld [vmem:[%s644_s1 + $0x50] sm:$0xff]  ;;  %v15_v26 = vld [vmem:[%s645_s0 + $0x8] sm:$0xff]  ;;  %v54_v39 = vsub.s32 3, %v41_v34 }
   0x6   :  { %366 = vmatpush1.bf16.msra.mxu0 %v365_v9  ;;  %v34_v20 = vld [vmem:[%s644_s1 + $0x60] sm:$0xff]  ;;  %v36_v23 = vld [vmem:[%s644_s1 + $0x70] sm:$0xff]  ;;  %v17_v28 = vld [vmem:[%s645_s0 + $0x18] sm:$0xff] }
   0x7   :  { %374 = vmatpush1.bf16.msra.mxu1 %v373_v13  ;;  %v369_v22 = vpack.c.bf16 %v34_v20, %v30_v19  ;;  %368 = vmatprep.subr.bf16.mxu0 %v367_v17  ;;  %v377_v24 = vpack.c.bf16 %v36_v23, %v32_v21  ;;  %v14_v25 = vld [vmem:[%s645_s0] sm:$0xff]  ;;  %v16_v27 = vld [vmem:[%s645_s0 + $0x10] sm:$0xff]  ;;  %v19_v30 = vld [vmem:[%s645_s0 + $0x28] sm:$0xff] }
   0x8   :  { %376 = vmatprep.subr.bf16.mxu1 %v375_v18  ;;  %v18_v29 = vld [vmem:[%s645_s0 + $0x20] sm:$0xff]  ;;  %v20_v31 = vld [vmem:[%s645_s0 + $0x30] sm:$0xff]  ;;  %v21_v32 = vld [vmem:[%s645_s0 + $0x38] sm:$0xff] }
   0x9   :  { %v38_v36 = vld [vmem:[%s646_s2] sm:$0xf] }
   0xa   :  { %370 = vmatpush1.bf16.msra.mxu0 %v369_v22  ;;  %v508_v40 = vrot.slane %v38_v36, %v42_v35  ;;  %v510_v41 = vrot.slane %v38_v36, %v50_v37  ;;  %v512_v42 = vrot.slane %v38_v36, %v46_v38  ;;  %v514_v43 = vrot.slane %v38_v36, %v54_v39 }
   0xb   :  { %378 = vmatpush1.bf16.msra.mxu1 %v377_v24 }
   0xd   :  { %347 = vmatmul.mubr.msk.f32.vlgmr.msra.gmra.mrb[0].mxu0 %vm60_vm0, %v14_v25 }
   0xe   :  { %355 = vmatmul.mubr.msk.f32.vlgmr.msra.gmra.mrb[0].mxu1 %vm60_vm0, %v14_v25  ;;  %155 = vmatprep.mubr.f32.mxu0 %v380_v3 }
   0xf   :  { %268 = vmatprep.mubr.f32.mxu1 %v380_v3 }
  0x11   :  { %348 = vmatmul.mubr.msk.f32.gmra.mrb[2].mxu0 %vm60_vm0, %v15_v26 }
  0x12   :  { %356 = vmatmul.mubr.msk.f32.gmra.mrb[2].mxu1 %vm60_vm0, %v15_v26  ;;  %161 = vmatprep.mubr.f32.mxu0 %v380_v3 }
  0x13   :  { %274 = vmatprep.mubr.f32.mxu1 %v380_v3 }
  0x15   :  { %349 = vmatmul.mubr.msk.f32.gmra.mrb[4].mxu0 %vm60_vm0, %v16_v27 }
  0x16   :  { %357 = vmatmul.mubr.msk.f32.gmra.mrb[4].mxu1 %vm60_vm0, %v16_v27  ;;  %167 = vmatprep.mubr.f32.mxu0 %v380_v3 }
  0x17   :  { %280 = vmatprep.mubr.f32.mxu1 %v380_v3 }
  0x19   :  { %350 = vmatmul.mubr.msk.f32.gmra.mrb[6].mxu0 %vm60_vm0, %v17_v28 }
  0x1a   :  { %358 = vmatmul.mubr.msk.f32.gmra.mrb[6].mxu1 %vm60_vm0, %v17_v28  ;;  %173 = vmatprep.mubr.f32.mxu0 %v380_v3 }
  0x1b   :  { %286 = vmatprep.mubr.f32.mxu1 %v380_v3 }
  0x1d   :  { %351 = vmatmul.mubr.msk.f32.gmra.mrb[8].mxu0 %vm60_vm0, %v18_v29 }
  0x1e   :  { %359 = vmatmul.mubr.msk.f32.gmra.mrb[8].mxu1 %vm60_vm0, %v18_v29  ;;  %179 = vmatprep.mubr.f32.mxu0 %v380_v3 }
  0x1f   :  { %292 = vmatprep.mubr.f32.mxu1 %v380_v3 }
  0x21   :  { %352 = vmatmul.mubr.msk.f32.gmra.mrb[10].mxu0 %vm60_vm0, %v19_v30 }
  0x22   :  { %360 = vmatmul.mubr.msk.f32.gmra.mrb[10].mxu1 %vm60_vm0, %v19_v30  ;;  %185 = vmatprep.mubr.f32.mxu0 %v380_v3 }
  0x23   :  { %298 = vmatprep.mubr.f32.mxu1 %v380_v3 }
  0x25   :  { %353 = vmatmul.mubr.msk.f32.gmra.mrb[12].mxu0 %vm60_vm0, %v20_v31 }
  0x26   :  { %361 = vmatmul.mubr.msk.f32.gmra.mrb[12].mxu1 %vm60_vm0, %v20_v31  ;;  %191 = vmatprep.mubr.f32.mxu0 %v380_v3 }
  0x27   :  { %304 = vmatprep.mubr.f32.mxu1 %v380_v3 }
  0x29   :  { %354 = vmatmul.mubr.msk.f32.gmra.mrb[14].mxu0 %vm60_vm0, %v21_v32 }
  0x2a   :  { %362 = vmatmul.mubr.msk.f32.gmra.mrb[14].mxu1 %vm60_vm0, %v21_v32 }
  0xe0   :  { %v151_v44 = vpop.f32.mrb[0].mxu0 }
  0xe1   :  { %v152_v45 = vadd.f32 %v151_v44, %v508_v40  ;;  %v264_v46 = vpop.f32.mrb[0].mxu1  ;;  %v153_v47 = vpop.f32.mrb[1].mxu0 }
  0xe2   :  { %v265_v48 = vadd.f32 %v264_v46, %v510_v41  ;;  %v154_v49 = vadd.f32 %v153_v47, %v512_v42  ;;  %v266_v50 = vpop.f32.mrb[1].mxu1 }
  0xe3   :  { %311 = vst [vmem:[%s647_s3] sm:$0xff] %v152_v45  ;;  %v267_v51 = vadd.f32 %v266_v50, %v514_v43 }
  0xe4   :  { %313 = vst [vmem:[%s647_s3 + $0x10] sm:$0xff] %v265_v48  ;;  %312 = vst [vmem:[%s647_s3 + $0x8] sm:$0xff] %v154_v49  ;;  %v157_v52 = vpop.f32.mrb[2].mxu0 }
  0xe5   :  { %314 = vst [vmem:[%s647_s3 + $0x18] sm:$0xff] %v267_v51  ;;  %v158_v53 = vadd.f32 %v157_v52, %v508_v40  ;;  %v270_v54 = vpop.f32.mrb[2].mxu1  ;;  %v159_v55 = vpop.f32.mrb[3].mxu0 }
  0xe6   :  { %v271_v56 = vadd.f32 %v270_v54, %v510_v41  ;;  %v160_v57 = vadd.f32 %v159_v55, %v512_v42  ;;  %v272_v58 = vpop.f32.mrb[3].mxu1 }
  0xe7   :  { %315 = vst [vmem:[%s647_s3 + $0x20] sm:$0xff] %v158_v53  ;;  %v273_v59 = vadd.f32 %v272_v58, %v514_v43 }
  0xe8   :  { %317 = vst [vmem:[%s647_s3 + $0x30] sm:$0xff] %v271_v56  ;;  %316 = vst [vmem:[%s647_s3 + $0x28] sm:$0xff] %v160_v57  ;;  %v163_v60 = vpop.f32.mrb[4].mxu0 }
  0xe9   :  { %318 = vst [vmem:[%s647_s3 + $0x38] sm:$0xff] %v273_v59  ;;  %v164_v61 = vadd.f32 %v163_v60, %v508_v40  ;;  %v276_v62 = vpop.f32.mrb[4].mxu1  ;;  %v165_v63 = vpop.f32.mrb[5].mxu0 }
  0xea   :  { %v277_v0 = vadd.f32 %v276_v62, %v510_v41  ;;  %v166_v1 = vadd.f32 %v165_v63, %v512_v42  ;;  %v278_v2 = vpop.f32.mrb[5].mxu1 }
  0xeb   :  { %319 = vst [vmem:[%s647_s3 + $0x40] sm:$0xff] %v164_v61  ;;  %v279_v3 = vadd.f32 %v278_v2, %v514_v43 }
  0xec   :  { %321 = vst [vmem:[%s647_s3 + $0x50] sm:$0xff] %v277_v0  ;;  %320 = vst [vmem:[%s647_s3 + $0x48] sm:$0xff] %v166_v1  ;;  %v169_v4 = vpop.f32.mrb[6].mxu0 }
  0xed   :  { %322 = vst [vmem:[%s647_s3 + $0x58] sm:$0xff] %v279_v3  ;;  %v170_v5 = vadd.f32 %v169_v4, %v508_v40  ;;  %v282_v6 = vpop.f32.mrb[6].mxu1  ;;  %v171_v7 = vpop.f32.mrb[7].mxu0 }
  0xee   :  { %v283_v8 = vadd.f32 %v282_v6, %v510_v41  ;;  %v172_v9 = vadd.f32 %v171_v7, %v512_v42  ;;  %v284_v10 = vpop.f32.mrb[7].mxu1 }
  0xef   :  { %323 = vst [vmem:[%s647_s3 + $0x60] sm:$0xff] %v170_v5  ;;  %v285_v11 = vadd.f32 %v284_v10, %v514_v43 }
  0xf0   :  { %325 = vst [vmem:[%s647_s3 + $0x70] sm:$0xff] %v283_v8  ;;  %324 = vst [vmem:[%s647_s3 + $0x68] sm:$0xff] %v172_v9  ;;  %v175_v12 = vpop.f32.mrb[8].mxu0 }
  0xf1   :  { %326 = vst [vmem:[%s647_s3 + $0x78] sm:$0xff] %v285_v11  ;;  %v176_v13 = vadd.f32 %v175_v12, %v508_v40  ;;  %v288_v14 = vpop.f32.mrb[8].mxu1  ;;  %v177_v15 = vpop.f32.mrb[9].mxu0 }
  0xf2   :  { %v289_v16 = vadd.f32 %v288_v14, %v510_v41  ;;  %v178_v17 = vadd.f32 %v177_v15, %v512_v42  ;;  %v290_v18 = vpop.f32.mrb[9].mxu1 }
  0xf3   :  { %327 = vst [vmem:[%s647_s3 + $0x80] sm:$0xff] %v176_v13  ;;  %v291_v19 = vadd.f32 %v290_v18, %v514_v43 }
  0xf4   :  { %329 = vst [vmem:[%s647_s3 + $0x90] sm:$0xff] %v289_v16  ;;  %328 = vst [vmem:[%s647_s3 + $0x88] sm:$0xff] %v178_v17  ;;  %v181_v20 = vpop.f32.mrb[10].mxu0 }
  0xf5   :  { %330 = vst [vmem:[%s647_s3 + $0x98] sm:$0xff] %v291_v19  ;;  %v182_v21 = vadd.f32 %v181_v20, %v508_v40  ;;  %v294_v22 = vpop.f32.mrb[10].mxu1  ;;  %v183_v23 = vpop.f32.mrb[11].mxu0 }
  0xf6   :  { %v295_v24 = vadd.f32 %v294_v22, %v510_v41  ;;  %v184_v25 = vadd.f32 %v183_v23, %v512_v42  ;;  %v296_v26 = vpop.f32.mrb[11].mxu1 }
  0xf7   :  { %331 = vst [vmem:[%s647_s3 + $0xa0] sm:$0xff] %v182_v21  ;;  %v297_v27 = vadd.f32 %v296_v26, %v514_v43 }
  0xf8   :  { %333 = vst [vmem:[%s647_s3 + $0xb0] sm:$0xff] %v295_v24  ;;  %332 = vst [vmem:[%s647_s3 + $0xa8] sm:$0xff] %v184_v25  ;;  %v187_v28 = vpop.f32.mrb[12].mxu0 }
  0xf9   :  { %334 = vst [vmem:[%s647_s3 + $0xb8] sm:$0xff] %v297_v27  ;;  %v188_v29 = vadd.f32 %v187_v28, %v508_v40  ;;  %v300_v30 = vpop.f32.mrb[12].mxu1  ;;  %v189_v31 = vpop.f32.mrb[13].mxu0 }
  0xfa   :  { %v301_v32 = vadd.f32 %v300_v30, %v510_v41  ;;  %v190_v33 = vadd.f32 %v189_v31, %v512_v42  ;;  %v302_v34 = vpop.f32.mrb[13].mxu1 }
  0xfb   :  { %335 = vst [vmem:[%s647_s3 + $0xc0] sm:$0xff] %v188_v29  ;;  %v303_v35 = vadd.f32 %v302_v34, %v514_v43 }
  0xfc   :  { %337 = vst [vmem:[%s647_s3 + $0xd0] sm:$0xff] %v301_v32  ;;  %336 = vst [vmem:[%s647_s3 + $0xc8] sm:$0xff] %v190_v33  ;;  %v193_v36 = vpop.f32.mrb[14].mxu0 }
  0xfd   :  { %338 = vst [vmem:[%s647_s3 + $0xd8] sm:$0xff] %v303_v35  ;;  %v194_v37 = vadd.f32 %v193_v36, %v508_v40  ;;  %v306_v38 = vpop.f32.mrb[14].mxu1  ;;  %v195_v39 = vpop.f32.mrb[15].mxu0 }
  0xfe   :  { %v307_v44 = vadd.f32 %v306_v38, %v510_v41  ;;  %v196_v45 = vadd.f32 %v195_v39, %v512_v42  ;;  %v308_v46 = vpop.f32.mrb[15].mxu1 }
  0xff   :  { %339 = vst [vmem:[%s647_s3 + $0xe0] sm:$0xff] %v194_v37  ;;  %v309_v47 = vadd.f32 %v308_v46, %v514_v43 }
 0x100   :  { %341 = vst [vmem:[%s647_s3 + $0xf0] sm:$0xff] %v307_v44  ;;  %340 = vst [vmem:[%s647_s3 + $0xe8] sm:$0xff] %v196_v45 }
 0x101   :  { %342 = vst [vmem:[%s647_s3 + $0xf8] sm:$0xff] %v309_v47 }

// kernel: rnn_forward.5
= control target key start
LH: loop header
LB: loop body
LE: loop exit
PB: predicated region body
PF: predicated region fallthrough
CT: control target
= control target key end

     0   :  { %s386_s0 = inlined_call_operand.vmem [shape: bf16[64,128], index: 0, kind: input, shape index: {}]   ;;  %s387_s1 = inlined_call_operand.vmem [shape: bf16[128,128], index: 1, kind: input, shape index: {}]   ;;  %s388_s2 = inlined_call_operand.vmem [shape: f32[1,128], index: 2, kind: input, shape index: {}]   ;;  %s389_s3 = inlined_call_operand.hbm [shape: f32[64,128], index: 3, kind: output, shape index: {}]  }
   0x1   :  { %v276_v0 = vld [vmem:[%s387_s1] sm:$0xff]   ;;  %v277_v1 = vld [vmem:[%s387_s1 + $0x8] sm:$0xff]   ;;  %v278_v2 = vld [vmem:[%s387_s1 + $0x10] sm:$0xff]  }
   0x2   :  { %233 = vmatprep.subr.bf16.mxu0 %v276_v0  ;;  %257 = vmatprep.subr.bf16.mxu1 %v276_v0  ;;  %v279_v3 = vld [vmem:[%s387_s1 + $0x18] sm:$0xff]   ;;  %v284_v4 = vld [vmem:[%s386_s0] sm:$0xff]   ;;  %v285_v5 = vld [vmem:[%s386_s0 + $0x10] sm:$0xff]  }
   0x3   :  { %234 = vmatpush3.bf16.msra.mxu0 %v276_v0  ;;  %265 = vmatpush3.bf16.msra.mxu1 %v276_v0  ;;  %v280_v6 = vld [vmem:[%s387_s1 + $0x20] sm:$0xff]  }
   0x4   :  { %235 = vmatprep.subr.bf16.mxu0 %v277_v1  ;;  %258 = vmatprep.subr.bf16.mxu1 %v277_v1 }
   0x5   :  { %249 = vmatprep.mubr.bf16.mxu0 %v284_v4 }
   0x7   :  { %236 = vmatpush3.bf16.msra.mxu0 %v277_v1  ;;  %266 = vmatpush3.bf16.msra.mxu1 %v277_v1 }
   0x8   :  { %237 = vmatprep.subr.bf16.mxu0 %v278_v2  ;;  %259 = vmatprep.subr.bf16.mxu1 %v278_v2 }
   0xb   :  { %238 = vmatpush3.bf16.msra.mxu0 %v278_v2  ;;  %267 = vmatpush3.bf16.msra.mxu1 %v278_v2 }
   0xc   :  { %239 = vmatprep.subr.bf16.mxu0 %v279_v3  ;;  %260 = vmatprep.subr.bf16.mxu1 %v279_v3 }
   0xd   :  { %8 = vsyncpa [#allocation3], 0  ;;  %253 = vmatprep.mubr.bf16.mxu1 %v285_v5  ;;  %v281_v7 = vld [vmem:[%s387_s1 + $0x28] sm:$0xff]   ;;  %v282_v8 = vld [vmem:[%s387_s1 + $0x30] sm:$0xff]  }
   0xe   :  { %v283_v9 = vld [vmem:[%s387_s1 + $0x38] sm:$0xff]   ;;  %v286_v10 = vld [vmem:[%s386_s0 + $0x8] sm:$0xff]   ;;  %v208_v12 = vld [vmem:[%s388_s2] ss:$0 sm:$0xff]  ;;  %s312_s1 = smov [#allocation2]  }
   0xf   :  { %240 = vmatpush3.bf16.msra.mxu0 %v279_v3  ;;  %268 = vmatpush3.bf16.msra.mxu1 %v279_v3  ;;  %v287_v11 = vld [vmem:[%s386_s0 + $0x18] sm:$0xff]   ;;  %s197_s11 = sshll.u32 %s312_s1, 4  ;;  %s198_s11 = int_to_ptr.vmem [resolvable:$true] %s197_s11 }
  0x10   :  { %241 = vmatprep.subr.bf16.mxu0 %v280_v6  ;;  %261 = vmatprep.subr.bf16.mxu1 %v280_v6  ;;  %s288_s0 = scalar_lea.vmem %s198_s11, 1024  ;;  %p293_p1 = scmp.lt.s32.totalorder %s198_s11, %s198_s11 }
  0x11   :  { %p289_p0 = scmp.ne.s32.totalorder %s198_s11, %s288_s0  ;;  %p294_p2 = scmp.lt.s32.totalorder %s288_s0, %s288_s0 }
  0x13   :  { %242 = vmatpush3.bf16.msra.mxu0 %v280_v6  ;;  %269 = vmatpush3.bf16.msra.mxu1 %v280_v6  ;;  %p295_p3 = por %p294_p2, %p293_p1 }
  0x14   :  { %243 = vmatprep.subr.bf16.mxu0 %v281_v7  ;;  %262 = vmatprep.subr.bf16.mxu1 %v281_v7 }
  0x15   :  { %p296_p4 = pnand %p295_p3, %p289_p0 }
  0x17   :  { %244 = vmatpush3.bf16.msra.mxu0 %v281_v7  ;;  %270 = vmatpush3.bf16.msra.mxu1 %v281_v7 }
  0x18   :  { %245 = vmatprep.subr.bf16.mxu0 %v282_v8  ;;  %263 = vmatprep.subr.bf16.mxu1 %v282_v8 }
  0x1b   :  { %246 = vmatpush3.bf16.msra.mxu0 %v282_v8  ;;  %271 = vmatpush3.bf16.msra.mxu1 %v282_v8 }
  0x1c   :  { %247 = vmatprep.subr.bf16.mxu0 %v283_v9  ;;  %264 = vmatprep.subr.bf16.mxu1 %v283_v9 }
  0x1f   :  { %248 = vmatpush3.bf16.msra.mxu0 %v283_v9  ;;  %272 = vmatpush3.bf16.msra.mxu1 %v283_v9 }
  0x22   :  { %250 = vmatmul.mubr.bf16.vlgmr.msra.gmra.mrb[0].mxu0 %v286_v10  ;;  %254 = vmatmul.mubr.bf16.vlgmr.msra.gmra.mrb[0].mxu1 %v287_v11 }
  0xf5   :  { %v251_v13 = vpop.f32.mrb[0].mxu0  ;;  %v255_v14 = vpop.f32.mrb[0].mxu1 }
  0xf6   :  { %v162_v15 = vadd.f32 %v251_v13, %v208_v12  ;;  %v178_v16 = vadd.f32 %v255_v14, %v208_v12  ;;  %v153_v17 = vpop.f32.mrb[1].mxu0  ;;  %v169_v18 = vpop.f32.mrb[1].mxu1 }
  0xf7   :  { %v154_v19 = vadd.f32 %v208_v12, %v153_v17  ;;  %v170_v20 = vadd.f32 %v208_v12, %v169_v18  ;;  %v252_v21 = vpop.f32.mrb[2].mxu0  ;;  %v256_v22 = vpop.f32.mrb[2].mxu1 }
  0xf8   :  { %186 = vst [vmem:[#allocation2 + $0x10] sm:$0xff] %v162_v15  ;;  %190 = vst [vmem:[#allocation2 + $0x30] sm:$0xff] %v178_v16  ;;  %v165_v23 = vadd.f32 %v252_v21, %v208_v12  ;;  %v181_v24 = vadd.f32 %v256_v22, %v208_v12  ;;  %v156_v25 = vpop.f32.mrb[3].mxu0  ;;  %v172_v26 = vpop.f32.mrb[3].mxu1 }
  0xf9   :  { %184 = vst [vmem:[#allocation2] sm:$0xff] %v154_v19  ;;  %188 = vst [vmem:[#allocation2 + $0x20] sm:$0xff] %v170_v20  ;;  %v157_v27 = vadd.f32 %v208_v12, %v156_v25  ;;  %v173_v28 = vadd.f32 %v208_v12, %v172_v26 }
  0xfa   :  { %187 = vst [vmem:[#allocation2 + $0x18] sm:$0xff] %v165_v23  ;;  %191 = vst [vmem:[#allocation2 + $0x38] sm:$0xff] %v181_v24 }
  0xfb   :  { %185 = vst [vmem:[#allocation2 + $0x8] sm:$0xff] %v157_v27  ;;  %189 = vst [vmem:[#allocation2 + $0x28] sm:$0xff] %v173_v28 }
  0xfc   :  { %299 = shalt.err (!%p296_p4)
}
  0xfd   :  { %s300_s13 = scalar_lea.hbm %s389_s3, 1024 }
  0xfe   :  { %p301_p5 = scmp.ne.s32.totalorder %s389_s3, %s300_s13  ;;  %p304_p6 = scmp.lt.u32.totalorder %s300_s13, %s389_s3 }
 0x100   :  { %p306_p7 = pnand %p304_p6, %p301_p5 }
 0x102   :  { %309 = shalt.err (!%p306_p7)
}
 0x103   :  { %s313_s18 = smov 128   ;;  %s314_s19 = smov 8  }
 0x104   :  { %203 = dma.vmem_to_hbm [thread:$0]  %s198_s11, 1024, %s389_s3, [#allocation3], %s313_s18, %s313_s18, %s314_s19  }
 0x105   :  { %310 = dma.done.wait [#allocation3], 1024  }
 0x106   :  { %311 = vsyncadd [#allocation3], 4294966272 }
 0x107   :  { %207 = vsyncpa [#allocation3], 1 }

// kernel: rnn_forward.4
= control target key start
LH: loop header
LB: loop body
LE: loop exit
PB: predicated region body
PF: predicated region fallthrough
CT: control target
= control target key end

     0   :  { %v2230_v3 = vmov 0.0   ;;  %s2950_s3 = inlined_call_operand.vmem [shape: f32[128,512], index: 3, kind: input, shape index: {}]   ;;  %s2951_s1 = inlined_call_operand.vmem [shape: f32[8,128], index: 1, kind: input, shape index: {}]   ;;  %s2952_s0 = inlined_call_operand.vmem [shape: f32[8,8,512], index: 0, kind: input, shape index: {}]   ;;  %s2953_s2 = inlined_call_operand.vmem [shape: f32[8,128], index: 2, kind: input, shape index: {}]   ;;  %s2954_s4 = inlined_call_operand.vmem [shape: bf16[8,8,128], index: 4, kind: output, shape index: {0}]   ;;  %s2955_s6 = inlined_call_operand.vmem [shape: f32[8,128], index: 6, kind: output, shape index: {2}]   ;;  %s2956_s5 = inlined_call_operand.vmem [shape: f32[8,128], index: 5, kind: output, shape index: {1}]  }
   0x1   :  { %v31_v0 = vld [vmem:[%s2950_s3 + $0x8] sm:$0xff]  ;;  %v30_v2 = vld [vmem:[%s2950_s3] sm:$0xff]  ;;  %162 = vmatprep.mubr.f32.mxu0 %v2230_v3  ;;  %233 = vmatprep.mubr.f32.mxu1 %v2230_v3  ;;  %v33_v19 = vld [vmem:[%s2950_s3 + $0x18] sm:$0xff] }
   0x2   :  { %v35_v1 = vld [vmem:[%s2950_s3 + $0x28] sm:$0xff]  ;;  %v34_v5 = vld [vmem:[%s2950_s3 + $0x20] sm:$0xff]  ;;  %v37_v20 = vld [vmem:[%s2950_s3 + $0x38] sm:$0xff] }
   0x3   :  { %v2277_v4 = vpack.c.bf16 %v35_v1, %v31_v0  ;;  %v39_v6 = vld [vmem:[%s2950_s3 + $0x48] sm:$0xff]  ;;  %v2288_v8 = vpack.c.bf16 %v34_v5, %v30_v2  ;;  %v38_v10 = vld [vmem:[%s2950_s3 + $0x40] sm:$0xff]  ;;  %v2329_v22 = vpack.c.bf16 %v37_v20, %v33_v19  ;;  %v32_v23 = vld [vmem:[%s2950_s3 + $0x10] sm:$0xff] }
   0x4   :  { %v43_v7 = vld [vmem:[%s2950_s3 + $0x68] sm:$0xff]  ;;  %v42_v11 = vld [vmem:[%s2950_s3 + $0x60] sm:$0xff]  ;;  %v36_v24 = vld [vmem:[%s2950_s3 + $0x30] sm:$0xff] }
   0x5   :  { %v2290_v9 = vpack.c.bf16 %v43_v7, %v39_v6  ;;  %v47_v12 = vld [vmem:[%s2950_s3 + $0x88] sm:$0xff]  ;;  %1590 = vmatprep.subr.bf16.mxu0 %v2277_v4  ;;  %v2306_v14 = vpack.c.bf16 %v42_v11, %v38_v10  ;;  %v46_v15 = vld [vmem:[%s2950_s3 + $0x80] sm:$0xff]  ;;  %v2337_v25 = vpack.c.bf16 %v36_v24, %v32_v23  ;;  %1622 = vmatprep.subr.bf16.mxu1 %v2329_v22  ;;  %v41_v27 = vld [vmem:[%s2950_s3 + $0x58] sm:$0xff] }
   0x6   :  { %v51_v13 = vld [vmem:[%s2950_s3 + $0xa8] sm:$0xff]  ;;  %1592 = vmatpush1.bf16.msra.mxu0 %v2288_v8  ;;  %v50_v16 = vld [vmem:[%s2950_s3 + $0xa0] sm:$0xff]  ;;  %v45_v28 = vld [vmem:[%s2950_s3 + $0x78] sm:$0xff] }
   0x7   :  { %1594 = vmatprep.subr.bf16.mxu0 %v2290_v9  ;;  %v2315_v17 = vpack.c.bf16 %v51_v13, %v47_v12  ;;  %v55_v18 = vld [vmem:[%s2950_s3 + $0xc8] sm:$0xff]  ;;  %v2340_v26 = vpack.c.bf16 %v50_v16, %v46_v15  ;;  %v40_v29 = vld [vmem:[%s2950_s3 + $0x50] sm:$0xff]  ;;  %v54_v31 = vld [vmem:[%s2950_s3 + $0xc0] sm:$0xff]  ;;  %1624 = vmatpush1.bf16.msra.mxu1 %v2337_v25  ;;  %v2362_v33 = vpack.c.bf16 %v45_v28, %v41_v27 }
   0x8   :  { %v59_v21 = vld [vmem:[%s2950_s3 + $0xe8] sm:$0xff]  ;;  %v58_v32 = vld [vmem:[%s2950_s3 + $0xe0] sm:$0xff]  ;;  %v44_v34 = vld [vmem:[%s2950_s3 + $0x70] sm:$0xff] }
   0x9   :  { %v2353_v30 = vpack.c.bf16 %v59_v21, %v55_v18  ;;  %v63_v35 = vld [vmem:[%s2950_s3 + $0x108] sm:$0xff]  ;;  %v2373_v37 = vpack.c.bf16 %v44_v34, %v40_v29  ;;  %v49_v38 = vld [vmem:[%s2950_s3 + $0x98] sm:$0xff]  ;;  %1626 = vmatprep.subr.bf16.mxu1 %v2362_v33  ;;  %v48_v40 = vld [vmem:[%s2950_s3 + $0x90] sm:$0xff]  ;;  %v2389_v42 = vpack.c.bf16 %v58_v32, %v54_v31 }
   0xa   :  { %1596 = vmatpush1.bf16.msra.mxu0 %v2306_v14  ;;  %v67_v36 = vld [vmem:[%s2950_s3 + $0x128] sm:$0xff]  ;;  %v53_v39 = vld [vmem:[%s2950_s3 + $0xb8] sm:$0xff]  ;;  %v52_v41 = vld [vmem:[%s2950_s3 + $0xb0] sm:$0xff] }
   0xb   :  { %1598 = vmatprep.subr.bf16.mxu0 %v2315_v17  ;;  %v62_v43 = vld [vmem:[%s2950_s3 + $0x100] sm:$0xff]  ;;  %v2397_v45 = vpack.c.bf16 %v53_v39, %v49_v38  ;;  %v2400_v46 = vpack.c.bf16 %v67_v36, %v63_v35  ;;  %1628 = vmatpush1.bf16.msra.mxu1 %v2373_v37  ;;  %v71_v47 = vld [vmem:[%s2950_s3 + $0x148] sm:$0xff]  ;;  %v2406_v48 = vpack.c.bf16 %v52_v41, %v48_v40  ;;  %v57_v49 = vld [vmem:[%s2950_s3 + $0xd8] sm:$0xff] }
   0xc   :  { %v66_v44 = vld [vmem:[%s2950_s3 + $0x120] sm:$0xff]  ;;  %v61_v50 = vld [vmem:[%s2950_s3 + $0xf8] sm:$0xff]  ;;  %v75_v51 = vld [vmem:[%s2950_s3 + $0x168] sm:$0xff] }
   0xd   :  { %1630 = vmatprep.subr.bf16.mxu1 %v2397_v45  ;;  %v2418_v52 = vpack.c.bf16 %v61_v50, %v57_v49  ;;  %v56_v53 = vld [vmem:[%s2950_s3 + $0xd0] sm:$0xff]  ;;  %v2427_v55 = vpack.c.bf16 %v66_v44, %v62_v43  ;;  %v65_v56 = vld [vmem:[%s2950_s3 + $0x118] sm:$0xff]  ;;  %v2436_v58 = vpack.c.bf16 %v75_v51, %v71_v47  ;;  %v70_v59 = vld [vmem:[%s2950_s3 + $0x140] sm:$0xff] }
   0xe   :  { %1600 = vmatpush1.bf16.msra.mxu0 %v2340_v26  ;;  %v60_v54 = vld [vmem:[%s2950_s3 + $0xf0] sm:$0xff]  ;;  %v69_v57 = vld [vmem:[%s2950_s3 + $0x138] sm:$0xff]  ;;  %v74_v60 = vld [vmem:[%s2950_s3 + $0x160] sm:$0xff] }
   0xf   :  { %1602 = vmatprep.subr.bf16.mxu0 %v2353_v30  ;;  %1632 = vmatpush1.bf16.msra.mxu1 %v2406_v48  ;;  %v79_v61 = vld [vmem:[%s2950_s3 + $0x188] sm:$0xff]  ;;  %v2448_v62 = vpack.c.bf16 %v60_v54, %v56_v53  ;;  %v2454_v0 = vpack.c.bf16 %v69_v57, %v65_v56  ;;  %v64_v1 = vld [vmem:[%s2950_s3 + $0x110] sm:$0xff]  ;;  %v73_v5 = vld [vmem:[%s2950_s3 + $0x158] sm:$0xff]  ;;  %v2469_v7 = vpack.c.bf16 %v74_v60, %v70_v59 }
  0x10   :  { %v83_v63 = vld [vmem:[%s2950_s3 + $0x1a8] sm:$0xff]  ;;  %1634 = vmatprep.subr.bf16.mxu1 %v2418_v52  ;;  %v68_v2 = vld [vmem:[%s2950_s3 + $0x130] sm:$0xff]  ;;  %v77_v6 = vld [vmem:[%s2950_s3 + $0x178] sm:$0xff] }
  0x11   :  { %v2472_v10 = vpack.c.bf16 %v83_v63, %v79_v61  ;;  %v78_v11 = vld [vmem:[%s2950_s3 + $0x180] sm:$0xff]  ;;  %v87_v13 = vld [vmem:[%s2950_s3 + $0x1c8] sm:$0xff]  ;;  %v2484_v15 = vpack.c.bf16 %v68_v2, %v64_v1  ;;  %v2490_v18 = vpack.c.bf16 %v77_v6, %v73_v5  ;;  %v72_v19 = vld [vmem:[%s2950_s3 + $0x150] sm:$0xff] }
  0x12   :  { %1604 = vmatpush1.bf16.msra.mxu0 %v2389_v42  ;;  %v82_v12 = vld [vmem:[%s2950_s3 + $0x1a0] sm:$0xff]  ;;  %v91_v16 = vld [vmem:[%s2950_s3 + $0x1e8] sm:$0xff]  ;;  %v76_v20 = vld [vmem:[%s2950_s3 + $0x170] sm:$0xff] }
  0x13   :  { %1606 = vmatprep.subr.bf16.mxu0 %v2400_v46  ;;  %1636 = vmatpush1.bf16.msra.mxu1 %v2448_v62  ;;  %v81_v21 = vld [vmem:[%s2950_s3 + $0x198] sm:$0xff]  ;;  %v2505_v24 = vpack.c.bf16 %v82_v12, %v78_v11  ;;  %v2508_v27 = vpack.c.bf16 %v91_v16, %v87_v13  ;;  %v86_v28 = vld [vmem:[%s2950_s3 + $0x1c0] sm:$0xff]  ;;  %v2517_v31 = vpack.c.bf16 %v76_v20, %v72_v19  ;;  %v80_v34 = vld [vmem:[%s2950_s3 + $0x190] sm:$0xff] }
  0x14   :  { %1638 = vmatprep.subr.bf16.mxu1 %v2454_v0  ;;  %v85_v23 = vld [vmem:[%s2950_s3 + $0x1b8] sm:$0xff]  ;;  %v90_v29 = vld [vmem:[%s2950_s3 + $0x1e0] sm:$0xff]  ;;  %v84_v35 = vld [vmem:[%s2950_s3 + $0x1b0] sm:$0xff] }
  0x15   :  { %v2520_v32 = vpack.c.bf16 %v85_v23, %v81_v21  ;;  %v89_v36 = vld [vmem:[%s2950_s3 + $0x1d8] sm:$0xff]  ;;  %v2535_v39 = vpack.c.bf16 %v90_v29, %v86_v28  ;;  %v2539_v40 = vpack.c.bf16 %v84_v35, %v80_v34  ;;  %v88_v43 = vld [vmem:[%s2950_s3 + $0x1d0] sm:$0xff]  ;;  %v24_v47 = vld [vmem:[%s2951_s1] sm:$0xff] }
  0x16   :  { %1608 = vmatpush1.bf16.msra.mxu0 %v2427_v55  ;;  %v93_v38 = vld [vmem:[%s2950_s3 + $0x1f8] sm:$0xff]  ;;  %v92_v44 = vld [vmem:[%s2950_s3 + $0x1f0] sm:$0xff]  ;;  %v94_v50 = vld [vmem:[%s2952_s0] sm:$0xff] }
  0x17   :  { %1610 = vmatprep.subr.bf16.mxu0 %v2436_v58  ;;  %1640 = vmatpush1.bf16.msra.mxu1 %v2484_v15  ;;  %v2542_v41 = vpack.c.bf16 %v93_v38, %v89_v36  ;;  %v2555_v49 = vpack.c.bf16 %v92_v44, %v88_v43  ;;  %v95_v51 = vld [vmem:[%s2952_s0 + $0x8] sm:$0xff]  ;;  %v97_v61 = vld [vmem:[%s2952_s0 + $0x18] sm:$0xff]  ;;  %v96_v5 = vld [vmem:[%s2952_s0 + $0x10] sm:$0xff] }
  0x18   :  { %1642 = vmatprep.subr.bf16.mxu1 %v2490_v18  ;;  %v26_v23 = vld [vmem:[%s2953_s2] sm:$0xff] }
  0x1a   :  { %1612 = vmatpush1.bf16.msra.mxu0 %v2469_v7 }
  0x1b   :  { %1614 = vmatprep.subr.bf16.mxu0 %v2472_v10  ;;  %1644 = vmatpush1.bf16.msra.mxu1 %v2517_v31 }
  0x1c   :  { %1646 = vmatprep.subr.bf16.mxu1 %v2520_v32 }
  0x1e   :  { %1616 = vmatpush1.bf16.msra.mxu0 %v2505_v24 }
  0x1f   :  { %1618 = vmatprep.subr.bf16.mxu0 %v2508_v27  ;;  %1648 = vmatpush1.bf16.msra.mxu1 %v2539_v40 }
  0x20   :  { %1650 = vmatprep.subr.bf16.mxu1 %v2542_v41 }
  0x22   :  { %1620 = vmatpush1.bf16.msra.mxu0 %v2535_v39 }
  0x23   :  { %1654 = vmatprep.subr.bf16.mxu0 %v2277_v4  ;;  %1652 = vmatpush1.bf16.msra.mxu1 %v2555_v49 }
  0x24   :  { %1686 = vmatprep.subr.bf16.mxu1 %v2329_v22 }
  0x25   :  { %163 = vmatmul.mubr.f32.vlgmr.msra.gmra.mrb[0].mxu0 %v24_v47 }
  0x26   :  { %1656 = vmatpush1.bf16.msra.mxu0 %v2288_v8  ;;  %339 = vmatprep.mubr.f32.mxu0 %v2230_v3 }
  0x27   :  { %1658 = vmatprep.subr.bf16.mxu0 %v2290_v9  ;;  %234 = vmatmul.mubr.f32.vlgmr.msra.gmra.mrb[0].mxu1 %v24_v47 }
  0x28   :  { %1688 = vmatpush1.bf16.msra.mxu1 %v2337_v25  ;;  %410 = vmatprep.mubr.f32.mxu1 %v2230_v3 }
  0x29   :  { %1690 = vmatprep.subr.bf16.mxu1 %v2362_v33 }
  0x2a   :  { %1660 = vmatpush1.bf16.msra.mxu0 %v2306_v14 }
  0x2b   :  { %1662 = vmatprep.subr.bf16.mxu0 %v2315_v17 }
  0x2c   :  { %1692 = vmatpush1.bf16.msra.mxu1 %v2373_v37 }
  0x2d   :  { %1694 = vmatprep.subr.bf16.mxu1 %v2397_v45 }
  0x2e   :  { %1664 = vmatpush1.bf16.msra.mxu0 %v2340_v26 }
  0x2f   :  { %1666 = vmatprep.subr.bf16.mxu0 %v2353_v30 }
  0x30   :  { %1696 = vmatpush1.bf16.msra.mxu1 %v2406_v48 }
  0x31   :  { %1698 = vmatprep.subr.bf16.mxu1 %v2418_v52 }
  0x32   :  { %1668 = vmatpush1.bf16.msra.mxu0 %v2389_v42 }
  0x33   :  { %1670 = vmatprep.subr.bf16.mxu0 %v2400_v46 }
  0x34   :  { %1700 = vmatpush1.bf16.msra.mxu1 %v2448_v62 }
  0x35   :  { %1702 = vmatprep.subr.bf16.mxu1 %v2454_v0 }
  0x36   :  { %1672 = vmatpush1.bf16.msra.mxu0 %v2427_v55 }
  0x37   :  { %1674 = vmatprep.subr.bf16.mxu0 %v2436_v58 }
  0x38   :  { %1704 = vmatpush1.bf16.msra.mxu1 %v2484_v15 }
  0x39   :  { %1706 = vmatprep.subr.bf16.mxu1 %v2490_v18 }
  0x3a   :  { %1676 = vmatpush1.bf16.msra.mxu0 %v2469_v7 }
  0x3b   :  { %1678 = vmatprep.subr.bf16.mxu0 %v2472_v10 }
  0x3c   :  { %1708 = vmatpush1.bf16.msra.mxu1 %v2517_v31 }
  0x3d   :  { %1710 = vmatprep.subr.bf16.mxu1 %v2520_v32 }
  0x3e   :  { %1680 = vmatpush1.bf16.msra.mxu0 %v2505_v24 }
  0x3f   :  { %1682 = vmatprep.subr.bf16.mxu0 %v2508_v27 }
  0x40   :  { %1712 = vmatpush1.bf16.msra.mxu1 %v2539_v40 }
  0x41   :  { %1714 = vmatprep.subr.bf16.mxu1 %v2542_v41 }
  0x42   :  { %1684 = vmatpush1.bf16.msra.mxu0 %v2535_v39 }
  0x43   :  { %1718 = vmatprep.subr.bf16.mxu0 %v2277_v4 }
  0x44   :  { %1716 = vmatpush1.bf16.msra.mxu1 %v2555_v49 }
  0x45   :  { %1750 = vmatprep.subr.bf16.mxu1 %v2329_v22 }
  0xf8   :  { %v164_v53 = vpop.f32.mrb[0].mxu0 }
  0xf9   :  { %v240_v54 = vadd.f32 %v164_v53, %v94_v50  ;;  %v166_v56 = vpop.f32.mrb[1].mxu0  ;;  %v1534_v53 = vld [vmem:[%s2952_s0 + $0x28] sm:$0xff] }
  0xfa   :  { %v241_v57 = vadd.f32 %v166_v56, %v95_v51  ;;  %v235_v63 = vpop.f32.mrb[0].mxu1  ;;  %v1533_v51 = vld [vmem:[%s2952_s0 + $0x20] sm:$0xff] }
  0xfb   :  { %v1530_v59 = vmul.f32 -1.442695, %v240_v54  ;;  %v237_v1 = vpop.f32.mrb[1].mxu1  ;;  %v242_v11 = vadd.f32 %v235_v63, %v96_v5 }
  0xfc   :  { %v1531_v60 = vmul.f32 -1.442695, %v241_v57  ;;  %v243_v2 = vadd.f32 %v237_v1, %v97_v61 }
  0xfd   :  { %2102 = vpow2.f32 %v1530_v59 }
  0xfe   :  { %2104 = vpow2.f32 %v1531_v60  ;;  %v1532_v6 = vmul.f32 -1.442695, %v243_v2  ;;  %v1536_v2 = vld [vmem:[%s2952_s0 + $0x38] sm:$0xff] }
 0x100   :  { %2106 = vpow2.f32 %v1532_v6  ;;  %v1535_v6 = vld [vmem:[%s2952_s0 + $0x30] sm:$0xff] }
 0x101   :  { %2108 = vtanh.f32 %v242_v11 }
 0x107   :  { %v2103_v12 = vpop.eup %2102 }
 0x108   :  { %v2105_v13 = vpop.eup %2104  ;;  %v247_v16 = vadd.f32 1.0, %v2103_v12 }
 0x109   :  { %v253_v19 = vadd.f32 1.0, %v2105_v13 }
 0x10a   :  { %2110 = vrcp.f32 %v247_v16  ;;  %v2107_v20 = vpop.eup %2106 }
 0x10b   :  { %2112 = vrcp.f32 %v253_v19  ;;  %v2109_v21 = vpop.eup %2108  ;;  %v260_v29 = vadd.f32 1.0, %v2107_v20 }
 0x10d   :  { %2114 = vrcp.f32 %v260_v29 }
 0x114   :  { %v2111_v28 = vpop.eup %2110 }
 0x115   :  { %v2113_v34 = vpop.eup %2112  ;;  %v264_v35 = vmul.f32 %v2111_v28, %v2109_v21 }
 0x116   :  { %v263_v36 = vmul.f32 %v2113_v34, %v26_v23 }
 0x117   :  { %v2115_v43 = vpop.eup %2114 }
 0x118   :  { %v2610_v38 = vadd.f32 %v264_v35, %v263_v36 }
 0x11a   :  { %2116 = vtanh.f32 %v2610_v38 }
 0x124   :  { %v2117_v44 = vpop.eup %2116 }
 0x125   :  { %v267_v47 = vmul.f32 %v2117_v44, %v2115_v43 }
 0x127   :  { %v268_v50 = vpack.c.bf16 %v267_v47, %v267_v47  ;;  %340 = vmatmul.mubr.f32.vlgmr.msra.gmra.mrb[2].mxu0 %v267_v47  ;;  %411 = vmatmul.mubr.f32.vlgmr.msra.gmra.mrb[2].mxu1 %v267_v47 }
 0x128   :  { %1720 = vmatpush1.bf16.msra.mxu0 %v2288_v8  ;;  %1752 = vmatpush1.bf16.msra.mxu1 %v2337_v25 }
 0x129   :  { %269 = vst [vmem:[%s2954_s4] sm:$0xf] %v268_v50  ;;  %1722 = vmatprep.subr.bf16.mxu0 %v2290_v9  ;;  %1754 = vmatprep.subr.bf16.mxu1 %v2362_v33 }
 0x12a   :  { %517 = vmatprep.mubr.f32.mxu0 %v2230_v3  ;;  %588 = vmatprep.mubr.f32.mxu1 %v2230_v3 }
 0x12c   :  { %1724 = vmatpush1.bf16.msra.mxu0 %v2306_v14  ;;  %1756 = vmatpush1.bf16.msra.mxu1 %v2373_v37 }
 0x12d   :  { %1726 = vmatprep.subr.bf16.mxu0 %v2315_v17  ;;  %1758 = vmatprep.subr.bf16.mxu1 %v2397_v45 }
 0x130   :  { %1728 = vmatpush1.bf16.msra.mxu0 %v2340_v26  ;;  %1760 = vmatpush1.bf16.msra.mxu1 %v2406_v48 }
 0x131   :  { %1730 = vmatprep.subr.bf16.mxu0 %v2353_v30  ;;  %1762 = vmatprep.subr.bf16.mxu1 %v2418_v52 }
 0x134   :  { %1732 = vmatpush1.bf16.msra.mxu0 %v2389_v42  ;;  %1764 = vmatpush1.bf16.msra.mxu1 %v2448_v62 }
 0x135   :  { %1734 = vmatprep.subr.bf16.mxu0 %v2400_v46  ;;  %1766 = vmatprep.subr.bf16.mxu1 %v2454_v0 }
 0x138   :  { %1736 = vmatpush1.bf16.msra.mxu0 %v2427_v55  ;;  %1768 = vmatpush1.bf16.msra.mxu1 %v2484_v15 }
 0x139   :  { %1738 = vmatprep.subr.bf16.mxu0 %v2436_v58  ;;  %1770 = vmatprep.subr.bf16.mxu1 %v2490_v18 }
 0x13c   :  { %1740 = vmatpush1.bf16.msra.mxu0 %v2469_v7  ;;  %1772 = vmatpush1.bf16.msra.mxu1 %v2517_v31 }
 0x13d   :  { %1742 = vmatprep.subr.bf16.mxu0 %v2472_v10  ;;  %1774 = vmatprep.subr.bf16.mxu1 %v2520_v32 }
 0x140   :  { %1744 = vmatpush1.bf16.msra.mxu0 %v2505_v24  ;;  %1776 = vmatpush1.bf16.msra.mxu1 %v2539_v40 }
 0x141   :  { %1746 = vmatprep.subr.bf16.mxu0 %v2508_v27  ;;  %1778 = vmatprep.subr.bf16.mxu1 %v2542_v41 }
 0x144   :  { %1748 = vmatpush1.bf16.msra.mxu0 %v2535_v39  ;;  %1780 = vmatpush1.bf16.msra.mxu1 %v2555_v49 }
 0x145   :  { %1782 = vmatprep.subr.bf16.mxu0 %v2277_v4  ;;  %1814 = vmatprep.subr.bf16.mxu1 %v2329_v22 }
 0x1fa   :  { %v341_v54 = vpop.f32.mrb[2].mxu0  ;;  %v412_v56 = vpop.f32.mrb[2].mxu1 }
 0x1fb   :  { %v417_v57 = vadd.f32 %v1533_v51, %v341_v54  ;;  %v343_v59 = vpop.f32.mrb[3].mxu0  ;;  %v414_v60 = vpop.f32.mrb[3].mxu1  ;;  %v419_v12 = vadd.f32 %v1535_v6, %v412_v56  ;;  %v1543_v6 = vld [vmem:[%s2952_s0 + $0x50] sm:$0xff] }
 0x1fc   :  { %v418_v61 = vadd.f32 %v1534_v53, %v343_v59  ;;  %v420_v5 = vadd.f32 %v1536_v2, %v414_v60  ;;  %v1542_v53 = vld [vmem:[%s2952_s0 + $0x48] sm:$0xff]  ;;  %v1544_v2 = vld [vmem:[%s2952_s0 + $0x58] sm:$0xff] }
 0x1fd   :  { %v1537_v63 = vmul.f32 -1.442695, %v417_v57 }
 0x1fe   :  { %v1538_v1 = vmul.f32 -1.442695, %v418_v61  ;;  %v1539_v11 = vmul.f32 -1.442695, %v420_v5 }
 0x1ff   :  { %2118 = vpow2.f32 %v1537_v63 }
 0x200   :  { %2120 = vpow2.f32 %v1538_v1 }
 0x201   :  { %2122 = vpow2.f32 %v1539_v11 }
 0x202   :  { %2124 = vtanh.f32 %v419_v12 }
 0x209   :  { %v2119_v13 = vpop.eup %2118 }
 0x20a   :  { %v2121_v16 = vpop.eup %2120  ;;  %v424_v19 = vadd.f32 1.0, %v2119_v13 }
 0x20b   :  { %v430_v20 = vadd.f32 1.0, %v2121_v16  ;;  %v2123_v21 = vpop.eup %2122 }
 0x20c   :  { %2126 = vrcp.f32 %v424_v19  ;;  %v2125_v23 = vpop.eup %2124  ;;  %v437_v35 = vadd.f32 1.0, %v2123_v21 }
 0x20d   :  { %2128 = vrcp.f32 %v430_v20 }
 0x20e   :  { %2130 = vrcp.f32 %v437_v35 }
 0x216   :  { %v2127_v28 = vpop.eup %2126 }
 0x217   :  { %v2129_v29 = vpop.eup %2128  ;;  %v441_v34 = vmul.f32 %v2127_v28, %v2125_v23 }
 0x218   :  { %v440_v36 = vmul.f32 %v2129_v29, %v2610_v38  ;;  %v2131_v44 = vpop.eup %2130  ;;  %v1541_v38 = vld [vmem:[%s2952_s0 + $0x40] sm:$0xff] }
 0x21a   :  { %v2663_v43 = vadd.f32 %v441_v34, %v440_v36 }
 0x21c   :  { %2132 = vtanh.f32 %v2663_v43 }
 0x226   :  { %v2133_v47 = vpop.eup %2132 }
 0x227   :  { %v444_v50 = vmul.f32 %v2133_v47, %v2131_v44 }
 0x229   :  { %v445_v51 = vpack.c.bf16 %v444_v50, %v444_v50  ;;  %518 = vmatmul.mubr.f32.vlgmr.msra.gmra.mrb[4].mxu0 %v444_v50  ;;  %589 = vmatmul.mubr.f32.vlgmr.msra.gmra.mrb[4].mxu1 %v444_v50 }
 0x22a   :  { %1784 = vmatpush1.bf16.msra.mxu0 %v2288_v8  ;;  %1816 = vmatpush1.bf16.msra.mxu1 %v2337_v25 }
 0x22b   :  { %1540 = vst [vmem:[%s2954_s4 + $0x4] sm:$0xf] %v445_v51  ;;  %1786 = vmatprep.subr.bf16.mxu0 %v2290_v9  ;;  %1818 = vmatprep.subr.bf16.mxu1 %v2362_v33 }
 0x22c   :  { %695 = vmatprep.mubr.f32.mxu0 %v2230_v3  ;;  %766 = vmatprep.mubr.f32.mxu1 %v2230_v3 }
 0x22e   :  { %1788 = vmatpush1.bf16.msra.mxu0 %v2306_v14  ;;  %1820 = vmatpush1.bf16.msra.mxu1 %v2373_v37 }
 0x22f   :  { %1790 = vmatprep.subr.bf16.mxu0 %v2315_v17  ;;  %1822 = vmatprep.subr.bf16.mxu1 %v2397_v45 }
 0x232   :  { %1792 = vmatpush1.bf16.msra.mxu0 %v2340_v26  ;;  %1824 = vmatpush1.bf16.msra.mxu1 %v2406_v48 }
 0x233   :  { %1794 = vmatprep.subr.bf16.mxu0 %v2353_v30  ;;  %1826 = vmatprep.subr.bf16.mxu1 %v2418_v52 }
 0x236   :  { %1796 = vmatpush1.bf16.msra.mxu0 %v2389_v42  ;;  %1828 = vmatpush1.bf16.msra.mxu1 %v2448_v62 }
 0x237   :  { %1798 = vmatprep.subr.bf16.mxu0 %v2400_v46  ;;  %1830 = vmatprep.subr.bf16.mxu1 %v2454_v0 }
 0x23a   :  { %1800 = vmatpush1.bf16.msra.mxu0 %v2427_v55  ;;  %1832 = vmatpush1.bf16.msra.mxu1 %v2484_v15 }
 0x23b   :  { %1802 = vmatprep.subr.bf16.mxu0 %v2436_v58  ;;  %1834 = vmatprep.subr.bf16.mxu1 %v2490_v18 }
 0x23e   :  { %1804 = vmatpush1.bf16.msra.mxu0 %v2469_v7  ;;  %1836 = vmatpush1.bf16.msra.mxu1 %v2517_v31 }
 0x23f   :  { %1806 = vmatprep.subr.bf16.mxu0 %v2472_v10  ;;  %1838 = vmatprep.subr.bf16.mxu1 %v2520_v32 }
 0x242   :  { %1808 = vmatpush1.bf16.msra.mxu0 %v2505_v24  ;;  %1840 = vmatpush1.bf16.msra.mxu1 %v2539_v40 }
 0x243   :  { %1810 = vmatprep.subr.bf16.mxu0 %v2508_v27  ;;  %1842 = vmatprep.subr.bf16.mxu1 %v2542_v41 }
 0x246   :  { %1812 = vmatpush1.bf16.msra.mxu0 %v2535_v39  ;;  %1844 = vmatpush1.bf16.msra.mxu1 %v2555_v49 }
 0x247   :  { %1846 = vmatprep.subr.bf16.mxu0 %v2277_v4  ;;  %1878 = vmatprep.subr.bf16.mxu1 %v2329_v22 }
 0x2fc   :  { %v519_v54 = vpop.f32.mrb[4].mxu0  ;;  %v590_v56 = vpop.f32.mrb[4].mxu1 }
 0x2fd   :  { %v595_v57 = vadd.f32 %v1541_v38, %v519_v54  ;;  %v521_v59 = vpop.f32.mrb[5].mxu0  ;;  %v592_v60 = vpop.f32.mrb[5].mxu1  ;;  %v597_v12 = vadd.f32 %v1543_v6, %v590_v56  ;;  %v1551_v6 = vld [vmem:[%s2952_s0 + $0x70] sm:$0xff] }
 0x2fe   :  { %v596_v61 = vadd.f32 %v1542_v53, %v521_v59  ;;  %v598_v5 = vadd.f32 %v1544_v2, %v592_v60  ;;  %v1550_v53 = vld [vmem:[%s2952_s0 + $0x68] sm:$0xff]  ;;  %v1552_v2 = vld [vmem:[%s2952_s0 + $0x78] sm:$0xff] }
 0x2ff   :  { %v1545_v63 = vmul.f32 -1.442695, %v595_v57 }
 0x300   :  { %v1546_v1 = vmul.f32 -1.442695, %v596_v61  ;;  %v1547_v11 = vmul.f32 -1.442695, %v598_v5 }
 0x301   :  { %2134 = vpow2.f32 %v1545_v63 }
 0x302   :  { %2136 = vpow2.f32 %v1546_v1 }
 0x303   :  { %2138 = vpow2.f32 %v1547_v11 }
 0x304   :  { %2140 = vtanh.f32 %v597_v12 }
 0x30b   :  { %v2135_v13 = vpop.eup %2134 }
 0x30c   :  { %v2137_v16 = vpop.eup %2136  ;;  %v602_v19 = vadd.f32 1.0, %v2135_v13 }
 0x30d   :  { %v608_v20 = vadd.f32 1.0, %v2137_v16  ;;  %v2139_v21 = vpop.eup %2138 }
 0x30e   :  { %2142 = vrcp.f32 %v602_v19  ;;  %v2141_v23 = vpop.eup %2140  ;;  %v615_v35 = vadd.f32 1.0, %v2139_v21 }
 0x30f   :  { %2144 = vrcp.f32 %v608_v20 }
 0x310   :  { %2146 = vrcp.f32 %v615_v35 }
 0x318   :  { %v2143_v28 = vpop.eup %2142 }
 0x319   :  { %v2145_v29 = vpop.eup %2144  ;;  %v619_v34 = vmul.f32 %v2143_v28, %v2141_v23 }
 0x31a   :  { %v618_v36 = vmul.f32 %v2145_v29, %v2663_v43  ;;  %v2147_v47 = vpop.eup %2146  ;;  %v1549_v43 = vld [vmem:[%s2952_s0 + $0x60] sm:$0xff] }
 0x31c   :  { %v2716_v44 = vadd.f32 %v619_v34, %v618_v36 }
 0x31e   :  { %2148 = vtanh.f32 %v2716_v44 }
 0x328   :  { %v2149_v50 = vpop.eup %2148 }
 0x329   :  { %v622_v51 = vmul.f32 %v2149_v50, %v2147_v47 }
 0x32b   :  { %v623_v38 = vpack.c.bf16 %v622_v51, %v622_v51  ;;  %696 = vmatmul.mubr.f32.vlgmr.msra.gmra.mrb[6].mxu0 %v622_v51  ;;  %767 = vmatmul.mubr.f32.vlgmr.msra.gmra.mrb[6].mxu1 %v622_v51 }
 0x32c   :  { %1848 = vmatpush1.bf16.msra.mxu0 %v2288_v8  ;;  %1880 = vmatpush1.bf16.msra.mxu1 %v2337_v25 }
 0x32d   :  { %1548 = vst [vmem:[%s2954_s4 + $0x8] sm:$0xf] %v623_v38  ;;  %1850 = vmatprep.subr.bf16.mxu0 %v2290_v9  ;;  %1882 = vmatprep.subr.bf16.mxu1 %v2362_v33 }
 0x32e   :  { %873 = vmatprep.mubr.f32.mxu0 %v2230_v3  ;;  %944 = vmatprep.mubr.f32.mxu1 %v2230_v3 }
 0x330   :  { %1852 = vmatpush1.bf16.msra.mxu0 %v2306_v14  ;;  %1884 = vmatpush1.bf16.msra.mxu1 %v2373_v37 }
 0x331   :  { %1854 = vmatprep.subr.bf16.mxu0 %v2315_v17  ;;  %1886 = vmatprep.subr.bf16.mxu1 %v2397_v45 }
 0x334   :  { %1856 = vmatpush1.bf16.msra.mxu0 %v2340_v26  ;;  %1888 = vmatpush1.bf16.msra.mxu1 %v2406_v48 }
 0x335   :  { %1858 = vmatprep.subr.bf16.mxu0 %v2353_v30  ;;  %1890 = vmatprep.subr.bf16.mxu1 %v2418_v52 }
 0x338   :  { %1860 = vmatpush1.bf16.msra.mxu0 %v2389_v42  ;;  %1892 = vmatpush1.bf16.msra.mxu1 %v2448_v62 }
 0x339   :  { %1862 = vmatprep.subr.bf16.mxu0 %v2400_v46  ;;  %1894 = vmatprep.subr.bf16.mxu1 %v2454_v0 }
 0x33c   :  { %1864 = vmatpush1.bf16.msra.mxu0 %v2427_v55  ;;  %1896 = vmatpush1.bf16.msra.mxu1 %v2484_v15 }
 0x33d   :  { %1866 = vmatprep.subr.bf16.mxu0 %v2436_v58  ;;  %1898 = vmatprep.subr.bf16.mxu1 %v2490_v18 }
 0x340   :  { %1868 = vmatpush1.bf16.msra.mxu0 %v2469_v7  ;;  %1900 = vmatpush1.bf16.msra.mxu1 %v2517_v31 }
 0x341   :  { %1870 = vmatprep.subr.bf16.mxu0 %v2472_v10  ;;  %1902 = vmatprep.subr.bf16.mxu1 %v2520_v32 }
 0x344   :  { %1872 = vmatpush1.bf16.msra.mxu0 %v2505_v24  ;;  %1904 = vmatpush1.bf16.msra.mxu1 %v2539_v40 }
 0x345   :  { %1874 = vmatprep.subr.bf16.mxu0 %v2508_v27  ;;  %1906 = vmatprep.subr.bf16.mxu1 %v2542_v41 }
 0x348   :  { %1876 = vmatpush1.bf16.msra.mxu0 %v2535_v39  ;;  %1908 = vmatpush1.bf16.msra.mxu1 %v2555_v49 }
 0x349   :  { %1910 = vmatprep.subr.bf16.mxu0 %v2277_v4  ;;  %1942 = vmatprep.subr.bf16.mxu1 %v2329_v22 }
 0x3fe   :  { %v697_v54 = vpop.f32.mrb[6].mxu0  ;;  %v768_v56 = vpop.f32.mrb[6].mxu1 }
 0x3ff   :  { %v773_v57 = vadd.f32 %v1549_v43, %v697_v54  ;;  %v699_v59 = vpop.f32.mrb[7].mxu0  ;;  %v770_v60 = vpop.f32.mrb[7].mxu1  ;;  %v775_v12 = vadd.f32 %v1551_v6, %v768_v56  ;;  %v1559_v6 = vld [vmem:[%s2952_s0 + $0x90] sm:$0xff] }
 0x400   :  { %v774_v61 = vadd.f32 %v1550_v53, %v699_v59  ;;  %v776_v5 = vadd.f32 %v1552_v2, %v770_v60  ;;  %v1558_v53 = vld [vmem:[%s2952_s0 + $0x88] sm:$0xff]  ;;  %v1560_v2 = vld [vmem:[%s2952_s0 + $0x98] sm:$0xff] }
 0x401   :  { %v1553_v63 = vmul.f32 -1.442695, %v773_v57 }
 0x402   :  { %v1554_v1 = vmul.f32 -1.442695, %v774_v61  ;;  %v1555_v11 = vmul.f32 -1.442695, %v776_v5 }
 0x403   :  { %2150 = vpow2.f32 %v1553_v63 }
 0x404   :  { %2152 = vpow2.f32 %v1554_v1 }
 0x405   :  { %2154 = vpow2.f32 %v1555_v11 }
 0x406   :  { %2156 = vtanh.f32 %v775_v12 }
 0x40d   :  { %v2151_v13 = vpop.eup %2150 }
 0x40e   :  { %v2153_v16 = vpop.eup %2152  ;;  %v780_v19 = vadd.f32 1.0, %v2151_v13 }
 0x40f   :  { %v786_v20 = vadd.f32 1.0, %v2153_v16  ;;  %v2155_v21 = vpop.eup %2154 }
 0x410   :  { %2158 = vrcp.f32 %v780_v19  ;;  %v2157_v23 = vpop.eup %2156  ;;  %v793_v35 = vadd.f32 1.0, %v2155_v21 }
 0x411   :  { %2160 = vrcp.f32 %v786_v20 }
 0x412   :  { %2162 = vrcp.f32 %v793_v35 }
 0x41a   :  { %v2159_v28 = vpop.eup %2158 }
 0x41b   :  { %v2161_v29 = vpop.eup %2160  ;;  %v797_v34 = vmul.f32 %v2159_v28, %v2157_v23 }
 0x41c   :  { %v796_v36 = vmul.f32 %v2161_v29, %v2716_v44  ;;  %v2163_v50 = vpop.eup %2162  ;;  %v1557_v44 = vld [vmem:[%s2952_s0 + $0x80] sm:$0xff] }
 0x41e   :  { %v2769_v47 = vadd.f32 %v797_v34, %v796_v36 }
 0x420   :  { %2164 = vtanh.f32 %v2769_v47 }
 0x42a   :  { %v2165_v51 = vpop.eup %2164 }
 0x42b   :  { %v800_v38 = vmul.f32 %v2165_v51, %v2163_v50 }
 0x42d   :  { %v801_v43 = vpack.c.bf16 %v800_v38, %v800_v38  ;;  %874 = vmatmul.mubr.f32.vlgmr.msra.gmra.mrb[8].mxu0 %v800_v38  ;;  %945 = vmatmul.mubr.f32.vlgmr.msra.gmra.mrb[8].mxu1 %v800_v38 }
 0x42e   :  { %1912 = vmatpush1.bf16.msra.mxu0 %v2288_v8  ;;  %1944 = vmatpush1.bf16.msra.mxu1 %v2337_v25 }
 0x42f   :  { %1556 = vst [vmem:[%s2954_s4 + $0xc] sm:$0xf] %v801_v43  ;;  %1914 = vmatprep.subr.bf16.mxu0 %v2290_v9  ;;  %1946 = vmatprep.subr.bf16.mxu1 %v2362_v33 }
 0x430   :  { %1051 = vmatprep.mubr.f32.mxu0 %v2230_v3  ;;  %1122 = vmatprep.mubr.f32.mxu1 %v2230_v3 }
 0x432   :  { %1916 = vmatpush1.bf16.msra.mxu0 %v2306_v14  ;;  %1948 = vmatpush1.bf16.msra.mxu1 %v2373_v37 }
 0x433   :  { %1918 = vmatprep.subr.bf16.mxu0 %v2315_v17  ;;  %1950 = vmatprep.subr.bf16.mxu1 %v2397_v45 }
 0x436   :  { %1920 = vmatpush1.bf16.msra.mxu0 %v2340_v26  ;;  %1952 = vmatpush1.bf16.msra.mxu1 %v2406_v48 }
 0x437   :  { %1922 = vmatprep.subr.bf16.mxu0 %v2353_v30  ;;  %1954 = vmatprep.subr.bf16.mxu1 %v2418_v52 }
 0x43a   :  { %1924 = vmatpush1.bf16.msra.mxu0 %v2389_v42  ;;  %1956 = vmatpush1.bf16.msra.mxu1 %v2448_v62 }
 0x43b   :  { %1926 = vmatprep.subr.bf16.mxu0 %v2400_v46  ;;  %1958 = vmatprep.subr.bf16.mxu1 %v2454_v0 }
 0x43e   :  { %1928 = vmatpush1.bf16.msra.mxu0 %v2427_v55  ;;  %1960 = vmatpush1.bf16.msra.mxu1 %v2484_v15 }
 0x43f   :  { %1930 = vmatprep.subr.bf16.mxu0 %v2436_v58  ;;  %1962 = vmatprep.subr.bf16.mxu1 %v2490_v18 }
 0x442   :  { %1932 = vmatpush1.bf16.msra.mxu0 %v2469_v7  ;;  %1964 = vmatpush1.bf16.msra.mxu1 %v2517_v31 }
 0x443   :  { %1934 = vmatprep.subr.bf16.mxu0 %v2472_v10  ;;  %1966 = vmatprep.subr.bf16.mxu1 %v2520_v32 }
 0x446   :  { %1936 = vmatpush1.bf16.msra.mxu0 %v2505_v24  ;;  %1968 = vmatpush1.bf16.msra.mxu1 %v2539_v40 }
 0x447   :  { %1938 = vmatprep.subr.bf16.mxu0 %v2508_v27  ;;  %1970 = vmatprep.subr.bf16.mxu1 %v2542_v41 }
 0x44a   :  { %1940 = vmatpush1.bf16.msra.mxu0 %v2535_v39  ;;  %1972 = vmatpush1.bf16.msra.mxu1 %v2555_v49 }
 0x44b   :  { %1974 = vmatprep.subr.bf16.mxu0 %v2277_v4  ;;  %2006 = vmatprep.subr.bf16.mxu1 %v2329_v22 }
 0x500   :  { %v875_v54 = vpop.f32.mrb[8].mxu0  ;;  %v946_v56 = vpop.f32.mrb[8].mxu1 }
 0x501   :  { %v951_v57 = vadd.f32 %v1557_v44, %v875_v54  ;;  %v877_v59 = vpop.f32.mrb[9].mxu0  ;;  %v948_v60 = vpop.f32.mrb[9].mxu1  ;;  %v953_v12 = vadd.f32 %v1559_v6, %v946_v56 }
 0x502   :  { %v952_v61 = vadd.f32 %v1558_v53, %v877_v59  ;;  %v954_v5 = vadd.f32 %v1560_v2, %v948_v60  ;;  %v1566_v53 = vld [vmem:[%s2952_s0 + $0xa8] sm:$0xff]  ;;  %v1567_v2 = vld [vmem:[%s2952_s0 + $0xb0] sm:$0xff] }
 0x503   :  { %v1561_v63 = vmul.f32 -1.442695, %v951_v57 }
 0x504   :  { %v1562_v1 = vmul.f32 -1.442695, %v952_v61  ;;  %v1563_v11 = vmul.f32 -1.442695, %v954_v5 }
 0x505   :  { %2166 = vpow2.f32 %v1561_v63 }
 0x506   :  { %2168 = vpow2.f32 %v1562_v1 }
 0x507   :  { %2170 = vpow2.f32 %v1563_v11 }
 0x508   :  { %2172 = vtanh.f32 %v953_v12 }
 0x50f   :  { %v2167_v13 = vpop.eup %2166 }
 0x510   :  { %v2169_v16 = vpop.eup %2168  ;;  %v958_v19 = vadd.f32 1.0, %v2167_v13 }
 0x511   :  { %v964_v20 = vadd.f32 1.0, %v2169_v16  ;;  %v2171_v21 = vpop.eup %2170 }
 0x512   :  { %2174 = vrcp.f32 %v958_v19  ;;  %v2173_v23 = vpop.eup %2172  ;;  %v971_v35 = vadd.f32 1.0, %v2171_v21 }
 0x513   :  { %2176 = vrcp.f32 %v964_v20 }
 0x514   :  { %2178 = vrcp.f32 %v971_v35 }
 0x51c   :  { %v2175_v28 = vpop.eup %2174 }
 0x51d   :  { %v2177_v29 = vpop.eup %2176  ;;  %v975_v34 = vmul.f32 %v2175_v28, %v2173_v23 }
 0x51e   :  { %v974_v36 = vmul.f32 %v2177_v29, %v2769_v47  ;;  %v2179_v51 = vpop.eup %2178  ;;  %v1565_v47 = vld [vmem:[%s2952_s0 + $0xa0] sm:$0xff] }
 0x520   :  { %v2822_v50 = vadd.f32 %v975_v34, %v974_v36 }
 0x522   :  { %2180 = vtanh.f32 %v2822_v50 }
 0x52c   :  { %v2181_v38 = vpop.eup %2180 }
 0x52d   :  { %v978_v43 = vmul.f32 %v2181_v38, %v2179_v51 }
 0x52f   :  { %v979_v44 = vpack.c.bf16 %v978_v43, %v978_v43  ;;  %1052 = vmatmul.mubr.f32.vlgmr.msra.gmra.mrb[10].mxu0 %v978_v43  ;;  %1123 = vmatmul.mubr.f32.vlgmr.msra.gmra.mrb[10].mxu1 %v978_v43 }
 0x530   :  { %1976 = vmatpush1.bf16.msra.mxu0 %v2288_v8  ;;  %2008 = vmatpush1.bf16.msra.mxu1 %v2337_v25 }
 0x531   :  { %1564 = vst [vmem:[%s2954_s4 + $0x10] sm:$0xf] %v979_v44  ;;  %1978 = vmatprep.subr.bf16.mxu0 %v2290_v9  ;;  %2010 = vmatprep.subr.bf16.mxu1 %v2362_v33  ;;  %v1582_v44 = vld [vmem:[%s2952_s0 + $0xe8] sm:$0xff] }
 0x532   :  { %1229 = vmatprep.mubr.f32.mxu0 %v2230_v3  ;;  %1300 = vmatprep.mubr.f32.mxu1 %v2230_v3 }
 0x534   :  { %1980 = vmatpush1.bf16.msra.mxu0 %v2306_v14  ;;  %2012 = vmatpush1.bf16.msra.mxu1 %v2373_v37 }
 0x535   :  { %1982 = vmatprep.subr.bf16.mxu0 %v2315_v17  ;;  %2014 = vmatprep.subr.bf16.mxu1 %v2397_v45 }
 0x538   :  { %1984 = vmatpush1.bf16.msra.mxu0 %v2340_v26  ;;  %2016 = vmatpush1.bf16.msra.mxu1 %v2406_v48 }
 0x539   :  { %1986 = vmatprep.subr.bf16.mxu0 %v2353_v30  ;;  %2018 = vmatprep.subr.bf16.mxu1 %v2418_v52 }
 0x53c   :  { %1988 = vmatpush1.bf16.msra.mxu0 %v2389_v42  ;;  %2020 = vmatpush1.bf16.msra.mxu1 %v2448_v62 }
 0x53d   :  { %1990 = vmatprep.subr.bf16.mxu0 %v2400_v46  ;;  %2022 = vmatprep.subr.bf16.mxu1 %v2454_v0 }
 0x540   :  { %1992 = vmatpush1.bf16.msra.mxu0 %v2427_v55  ;;  %2024 = vmatpush1.bf16.msra.mxu1 %v2484_v15 }
 0x541   :  { %1994 = vmatprep.subr.bf16.mxu0 %v2436_v58  ;;  %2026 = vmatprep.subr.bf16.mxu1 %v2490_v18 }
 0x544   :  { %1996 = vmatpush1.bf16.msra.mxu0 %v2469_v7  ;;  %2028 = vmatpush1.bf16.msra.mxu1 %v2517_v31 }
 0x545   :  { %1998 = vmatprep.subr.bf16.mxu0 %v2472_v10  ;;  %2030 = vmatprep.subr.bf16.mxu1 %v2520_v32 }
 0x548   :  { %2000 = vmatpush1.bf16.msra.mxu0 %v2505_v24  ;;  %2032 = vmatpush1.bf16.msra.mxu1 %v2539_v40 }
 0x549   :  { %2002 = vmatprep.subr.bf16.mxu0 %v2508_v27  ;;  %2034 = vmatprep.subr.bf16.mxu1 %v2542_v41 }
 0x54c   :  { %2004 = vmatpush1.bf16.msra.mxu0 %v2535_v39  ;;  %2036 = vmatpush1.bf16.msra.mxu1 %v2555_v49 }
 0x54d   :  { %2038 = vmatprep.subr.bf16.mxu0 %v2277_v4  ;;  %2070 = vmatprep.subr.bf16.mxu1 %v2329_v22  ;;  %v1568_v4 = vld [vmem:[%s2952_s0 + $0xb8] sm:$0xff] }
 0x602   :  { %v1053_v54 = vpop.f32.mrb[10].mxu0  ;;  %v1124_v56 = vpop.f32.mrb[10].mxu1 }
 0x603   :  { %v1129_v57 = vadd.f32 %v1565_v47, %v1053_v54  ;;  %v1055_v59 = vpop.f32.mrb[11].mxu0  ;;  %v1126_v60 = vpop.f32.mrb[11].mxu1  ;;  %v1131_v6 = vadd.f32 %v1567_v2, %v1124_v56 }
 0x604   :  { %v1130_v61 = vadd.f32 %v1566_v53, %v1055_v59  ;;  %v1132_v22 = vadd.f32 %v1568_v4, %v1126_v60  ;;  %v1583_v4 = vld [vmem:[%s2952_s0 + $0xf0] sm:$0xff] }
 0x605   :  { %v1569_v63 = vmul.f32 -1.442695, %v1129_v57 }
 0x606   :  { %v1570_v1 = vmul.f32 -1.442695, %v1130_v61  ;;  %v1571_v5 = vmul.f32 -1.442695, %v1132_v22 }
 0x607   :  { %2182 = vpow2.f32 %v1569_v63  ;;  %v1584_v63 = vld [vmem:[%s2952_s0 + $0xf8] sm:$0xff] }
 0x608   :  { %2184 = vpow2.f32 %v1570_v1 }
 0x609   :  { %2186 = vpow2.f32 %v1571_v5 }
 0x60a   :  { %2188 = vtanh.f32 %v1131_v6 }
 0x611   :  { %v2183_v11 = vpop.eup %2182 }
 0x612   :  { %v2185_v12 = vpop.eup %2184  ;;  %v1136_v13 = vadd.f32 1.0, %v2183_v11 }
 0x613   :  { %v1142_v16 = vadd.f32 1.0, %v2185_v12  ;;  %v2187_v19 = vpop.eup %2186 }
 0x614   :  { %2190 = vrcp.f32 %v1136_v13  ;;  %v2189_v20 = vpop.eup %2188  ;;  %v1149_v29 = vadd.f32 1.0, %v2187_v19 }
 0x615   :  { %2192 = vrcp.f32 %v1142_v16 }
 0x616   :  { %2194 = vrcp.f32 %v1149_v29 }
 0x61e   :  { %v2191_v21 = vpop.eup %2190 }
 0x61f   :  { %v2193_v23 = vpop.eup %2192  ;;  %v1153_v28 = vmul.f32 %v2191_v21, %v2189_v20 }
 0x620   :  { %v1152_v34 = vmul.f32 %v2193_v23, %v2822_v50  ;;  %v2195_v36 = vpop.eup %2194  ;;  %v1581_v50 = vld [vmem:[%s2952_s0 + $0xe0] sm:$0xff] }
 0x622   :  { %v2875_v35 = vadd.f32 %v1153_v28, %v1152_v34 }
 0x624   :  { %2196 = vtanh.f32 %v2875_v35 }
 0x62e   :  { %v2197_v51 = vpop.eup %2196 }
 0x62f   :  { %v1156_v38 = vmul.f32 %v2197_v51, %v2195_v36 }
 0x631   :  { %v1157_v43 = vpack.c.bf16 %v1156_v38, %v1156_v38  ;;  %1230 = vmatmul.mubr.f32.vlgmr.msra.gmra.mrb[12].mxu0 %v1156_v38  ;;  %1301 = vmatmul.mubr.f32.vlgmr.msra.gmra.mrb[12].mxu1 %v1156_v38 }
 0x632   :  { %2040 = vmatpush1.bf16.msra.mxu0 %v2288_v8  ;;  %2072 = vmatpush1.bf16.msra.mxu1 %v2337_v25  ;;  %v1574_v8 = vld [vmem:[%s2952_s0 + $0xc8] sm:$0xff] }
 0x633   :  { %1572 = vst [vmem:[%s2954_s4 + $0x14] sm:$0xf] %v1157_v43  ;;  %2042 = vmatprep.subr.bf16.mxu0 %v2290_v9  ;;  %2074 = vmatprep.subr.bf16.mxu1 %v2362_v33 }
 0x634   :  { %1407 = vmatprep.mubr.f32.mxu0 %v2230_v3  ;;  %1478 = vmatprep.mubr.f32.mxu1 %v2230_v3  ;;  %v1573_v3 = vld [vmem:[%s2952_s0 + $0xc0] sm:$0xff] }
 0x636   :  { %2044 = vmatpush1.bf16.msra.mxu0 %v2306_v14  ;;  %2076 = vmatpush1.bf16.msra.mxu1 %v2373_v37 }
 0x637   :  { %2046 = vmatprep.subr.bf16.mxu0 %v2315_v17  ;;  %2078 = vmatprep.subr.bf16.mxu1 %v2397_v45 }
 0x63a   :  { %2048 = vmatpush1.bf16.msra.mxu0 %v2340_v26  ;;  %2080 = vmatpush1.bf16.msra.mxu1 %v2406_v48 }
 0x63b   :  { %2050 = vmatprep.subr.bf16.mxu0 %v2353_v30  ;;  %2082 = vmatprep.subr.bf16.mxu1 %v2418_v52 }
 0x63e   :  { %2052 = vmatpush1.bf16.msra.mxu0 %v2389_v42  ;;  %2084 = vmatpush1.bf16.msra.mxu1 %v2448_v62  ;;  %v1576_v42 = vld [vmem:[%s2952_s0 + $0xd8] sm:$0xff] }
 0x63f   :  { %2054 = vmatprep.subr.bf16.mxu0 %v2400_v46  ;;  %2086 = vmatprep.subr.bf16.mxu1 %v2454_v0  ;;  %v1575_v46 = vld [vmem:[%s2952_s0 + $0xd0] sm:$0xff] }
 0x642   :  { %2056 = vmatpush1.bf16.msra.mxu0 %v2427_v55  ;;  %2088 = vmatpush1.bf16.msra.mxu1 %v2484_v15 }
 0x643   :  { %2058 = vmatprep.subr.bf16.mxu0 %v2436_v58  ;;  %2090 = vmatprep.subr.bf16.mxu1 %v2490_v18 }
 0x646   :  { %2060 = vmatpush1.bf16.msra.mxu0 %v2469_v7  ;;  %2092 = vmatpush1.bf16.msra.mxu1 %v2517_v31 }
 0x647   :  { %2062 = vmatprep.subr.bf16.mxu0 %v2472_v10  ;;  %2094 = vmatprep.subr.bf16.mxu1 %v2520_v32 }
 0x64a   :  { %2064 = vmatpush1.bf16.msra.mxu0 %v2505_v24  ;;  %2096 = vmatpush1.bf16.msra.mxu1 %v2539_v40 }
 0x64b   :  { %2066 = vmatprep.subr.bf16.mxu0 %v2508_v27  ;;  %2098 = vmatprep.subr.bf16.mxu1 %v2542_v41 }
 0x64e   :  { %2068 = vmatpush1.bf16.msra.mxu0 %v2535_v39  ;;  %2100 = vmatpush1.bf16.msra.mxu1 %v2555_v49 }
 0x704   :  { %v1231_v9 = vpop.f32.mrb[12].mxu0  ;;  %v1302_v14 = vpop.f32.mrb[12].mxu1 }
 0x705   :  { %v1307_v17 = vadd.f32 %v1573_v3, %v1231_v9  ;;  %v1233_v25 = vpop.f32.mrb[13].mxu0  ;;  %v1304_v26 = vpop.f32.mrb[13].mxu1  ;;  %v1309_v52 = vadd.f32 %v1575_v46, %v1302_v14 }
 0x706   :  { %v1308_v30 = vadd.f32 %v1574_v8, %v1233_v25  ;;  %v1310_v45 = vadd.f32 %v1576_v42, %v1304_v26 }
 0x707   :  { %v1577_v33 = vmul.f32 -1.442695, %v1307_v17 }
 0x708   :  { %v1578_v37 = vmul.f32 -1.442695, %v1308_v30  ;;  %v1579_v48 = vmul.f32 -1.442695, %v1310_v45 }
 0x709   :  { %2198 = vpow2.f32 %v1577_v33 }
 0x70a   :  { %2200 = vpow2.f32 %v1578_v37 }
 0x70b   :  { %2202 = vpow2.f32 %v1579_v48 }
 0x70c   :  { %2204 = vtanh.f32 %v1309_v52 }
 0x713   :  { %v2199_v55 = vpop.eup %2198 }
 0x714   :  { %v2201_v58 = vpop.eup %2200  ;;  %v1314_v62 = vadd.f32 1.0, %v2199_v55 }
 0x715   :  { %v1320_v0 = vadd.f32 1.0, %v2201_v58  ;;  %v2203_v7 = vpop.eup %2202 }
 0x716   :  { %2206 = vrcp.f32 %v1314_v62  ;;  %v2205_v10 = vpop.eup %2204  ;;  %v1327_v27 = vadd.f32 1.0, %v2203_v7 }
 0x717   :  { %2208 = vrcp.f32 %v1320_v0 }
 0x718   :  { %2210 = vrcp.f32 %v1327_v27 }
 0x720   :  { %v2207_v15 = vpop.eup %2206 }
 0x721   :  { %v2209_v18 = vpop.eup %2208  ;;  %v1331_v24 = vmul.f32 %v2207_v15, %v2205_v10 }
 0x722   :  { %v1330_v31 = vmul.f32 %v2209_v18, %v2875_v35  ;;  %v2211_v39 = vpop.eup %2210 }
 0x724   :  { %v1332_v32 = vadd.f32 %v1331_v24, %v1330_v31 }
 0x726   :  { %2212 = vtanh.f32 %v1332_v32 }
 0x730   :  { %v2213_v40 = vpop.eup %2212 }
 0x731   :  { %v1334_v41 = vmul.f32 %v2213_v40, %v2211_v39 }
 0x733   :  { %v1335_v49 = vpack.c.bf16 %v1334_v41, %v1334_v41  ;;  %1408 = vmatmul.mubr.f32.vlgmr.msra.gmra.mrb[14].mxu0 %v1334_v41  ;;  %1479 = vmatmul.mubr.f32.vlgmr.msra.gmra.mrb[14].mxu1 %v1334_v41 }
 0x735   :  { %1580 = vst [vmem:[%s2954_s4 + $0x18] sm:$0xf] %v1335_v49 }
 0x806   :  { %v1409_v47 = vpop.f32.mrb[14].mxu0  ;;  %v1480_v53 = vpop.f32.mrb[14].mxu1 }
 0x807   :  { %v1485_v54 = vadd.f32 %v1581_v50, %v1409_v47  ;;  %v1411_v56 = vpop.f32.mrb[15].mxu0  ;;  %v1482_v57 = vpop.f32.mrb[15].mxu1  ;;  %v1487_v2 = vadd.f32 %v1583_v4, %v1480_v53 }
 0x808   :  { %v1486_v59 = vadd.f32 %v1582_v44, %v1411_v56  ;;  %v1488_v1 = vadd.f32 %v1584_v63, %v1482_v57 }
 0x809   :  { %v1585_v60 = vmul.f32 -1.442695, %v1485_v54 }
 0x80a   :  { %v1586_v61 = vmul.f32 -1.442695, %v1486_v59  ;;  %v1587_v22 = vmul.f32 -1.442695, %v1488_v1 }
 0x80b   :  { %2214 = vpow2.f32 %v1585_v60 }
 0x80c   :  { %2216 = vpow2.f32 %v1586_v61 }
 0x80d   :  { %2218 = vpow2.f32 %v1587_v22 }
 0x80e   :  { %2220 = vtanh.f32 %v1487_v2 }
 0x815   :  { %v2215_v5 = vpop.eup %2214 }
 0x816   :  { %v2217_v6 = vpop.eup %2216  ;;  %v1492_v11 = vadd.f32 1.0, %v2215_v5 }
 0x817   :  { %v1498_v12 = vadd.f32 1.0, %v2217_v6  ;;  %v2219_v13 = vpop.eup %2218 }
 0x818   :  { %2222 = vrcp.f32 %v1492_v11  ;;  %v2221_v16 = vpop.eup %2220  ;;  %v1505_v23 = vadd.f32 1.0, %v2219_v13 }
 0x819   :  { %2224 = vrcp.f32 %v1498_v12 }
 0x81a   :  { %2226 = vrcp.f32 %v1505_v23 }
 0x822   :  { %v2223_v19 = vpop.eup %2222 }
 0x823   :  { %v2225_v20 = vpop.eup %2224  ;;  %v1509_v21 = vmul.f32 %v2223_v19, %v2221_v16 }
 0x824   :  { %v1508_v28 = vmul.f32 %v2225_v20, %v1332_v32  ;;  %v2227_v34 = vpop.eup %2226 }
 0x826   :  { %v1510_v29 = vadd.f32 %v1509_v21, %v1508_v28 }
 0x828   :  { %2228 = vtanh.f32 %v1510_v29  ;;  %1517 = vst [vmem:[%s2955_s6] sm:$0xff] %v1510_v29 }
 0x832   :  { %v2229_v35 = vpop.eup %2228 }
 0x833   :  { %v1512_v36 = vmul.f32 %v2229_v35, %v2227_v34 }
 0x835   :  { %v1513_v51 = vpack.c.bf16 %v1512_v36, %v1512_v36  ;;  %1516 = vst [vmem:[%s2956_s5] sm:$0xff] %v1512_v36 }
 0x837   :  { %1588 = vst [vmem:[%s2954_s4 + $0x1c] sm:$0xf] %v1513_v51 }

</bundles_post_ra>
